<compile_context>
chip_gen: v7x
topology: tpu7x:2x2x1
jax: 0.10.0
libtpu: 0.0.40
codegen_flags: <defaults>
</compile_context>

<pallas_src>
import numpy as np
import jax
import jax.numpy as jnp
from jax import lax
from jax.experimental import pallas as pl
from jax.experimental.pallas import tpu as pltpu


# ----------------------------- Pallas kernel ---------------------------------
def _decoder_kernel(x_ref,
                    w1_ref, b1_ref, u1_ref,
                    w2_ref, b2_ref, u2_ref,
                    w3_ref, b3_ref, u3_ref,
                    f_ref, o_ref):
    """Whole decoder for one sample, channel-major (channels, flat_spatial).

    x_ref : (Cin, T)            tokens, channel-major
    w*_ref: (9, Cout, Cin)      per-tap conv weights
    b*_ref: (Cout, 1)           bias (f32)
    u*_ref: (9, R_prev, R_l)    0/1 pad+shift(+2x upsample) selection matrices
    f_ref : (R_3, H*W)          final 2x upsample + valid-column selection
    o_ref : (3, H*W)            lane-dense NCHW rows for this sample
    """
    cdt = x_ref.dtype                                 # compute dtype (f32/bf16)
    a = x_ref[...]                                    # (Cin, T)

    for w_ref, b_ref, u_ref in ((w1_ref, b1_ref, u1_ref),
                                (w2_ref, b2_ref, u2_ref),
                                (w3_ref, b3_ref, u3_ref)):
        acc = None
        for k in range(9):                            # 3x3 taps, unrolled
            # pad + shift (+ upsample) of the feature map as an exact 0/1
            # selection matmul (MXU); result entries are exactly entries of a.
            h = jnp.dot(a, u_ref[k],
                        preferred_element_type=jnp.float32).astype(cdt)
            # per-tap weight matmul with f32 accumulation.
            t = jnp.dot(w_ref[k], h, preferred_element_type=jnp.float32)
            acc = t if acc is None else acc + t
        a = jnp.maximum(acc + b_ref[...], 0.0).astype(cdt)   # bias + ReLU

    # final 2x nearest upsample + flatten straight into NCHW rows (3, H*W).
    out = jnp.dot(a, f_ref[...], preferred_element_type=jnp.float32)
    o_ref[...] = out.astype(o_ref.dtype)


# ----------------------- host-built constant matrices ------------------------
# TODO(synk): these 0/1 selection matrices scale as O((H*W)^2); for large
# target resolutions switch to a spatially tiled shifted-slice conv instead.
def _build_decoder_constants(gh, gw):
    """0/1 matrices implementing pad+tap-shift (and 2x nearest upsample).

    Representation of a conv output at spatial size (h, w): flat length
    h*(w+2) with row width wp=w+2; columns x<w are valid, x in {w, w+1} are
    junk (never selected downstream).
    """
    def tap_mats(h, w, r_prev, src):
        wp = w + 2
        u = np.zeros((9, r_prev, h * wp), np.float32)
        for k in range(9):
            dy, dx = k // 3, k % 3
            for y in range(h):
                for x in range(wp):
                    py, px = y + dy, x + dx           # padded-grid coords
                    if 1 <= py <= h and 1 <= px <= w:  # interior (not zero pad)
                        u[k, src(py - 1, px - 1), y * wp + x] = 1.0
        return u

    h1, w1 = gh, gw                 # layer-1 conv spatial dims
    h2, w2 = 2 * gh, 2 * gw         # layer-2 conv spatial dims (after 2x up)
    h3, w3 = 4 * gh, 4 * gw         # layer-3 conv spatial dims (after 2x up)
    H, W = 8 * gh, 8 * gw           # final image dims (after last 2x up)

    u1 = tap_mats(h1, w1, gh * gw, lambda yy, xx: yy * gw + xx)
    u2 = tap_mats(h2, w2, h1 * (w1 + 2),
                  lambda yy, xx: (yy // 2) * (w1 + 2) + xx // 2)
    u3 = tap_mats(h3, w3, h2 * (w2 + 2),
                  lambda yy, xx: (yy // 2) * (w2 + 2) + xx // 2)

    f = np.zeros((h3 * (w3 + 2), H * W), np.float32)
    for p in range(H * W):
        Y, X = p // W, p % W
        f[(Y // 2) * (w3 + 2) + X // 2, p] = 1.0
    return u1, u2, u3, f


def _full_spec(arr):
    nd = arr.ndim
    return pl.BlockSpec(arr.shape, lambda n: (0,) * nd)


# ------------------------------- wrapper --------------------------------------
def cnn_decoder_forward(x_tokens, params, img_h, img_w,
                        compute_dtype=jnp.float32):
    """Pallas implementation of CNNDecoder.forward.

    x_tokens: (B, (img_h*img_w)//64, embed_dim)
    params:   [(w_hwio (3,3,Cin,Cout), b (Cout,)) for layer1..layer3]
    returns:  (B, 3, img_h, img_w) float32
    """
    B, T, C = x_tokens.shape
    gh, gw = img_h // 8, img_w // 8
    assert T == gh * gw, (T, gh, gw)
    HW = img_h * img_w

    # trace-time constants (numpy on host -> folded into the executable).
    u1, u2, u3, f = _build_decoder_constants(gh, gw)
    u1 = jnp.asarray(u1, compute_dtype)
    u2 = jnp.asarray(u2, compute_dtype)
    u3 = jnp.asarray(u3, compute_dtype)
    f = jnp.asarray(f, compute_dtype)

    # channel-major tokens: (B, C, T)
    x_t = jnp.transpose(x_tokens, (0, 2, 1)).astype(compute_dtype)

    def prep(w_hwio, b):
        cin, cout = w_hwio.shape[2], w_hwio.shape[3]
        wt = jnp.transpose(w_hwio, (0, 1, 3, 2)).reshape(9, cout, cin)
        return wt.astype(compute_dtype), b.reshape(cout, 1).astype(jnp.float32)

    (w1, b1), (w2, b2), (w3, b3) = [prep(w, b) for (w, b) in params]

    out_flat = pl.pallas_call(
        _decoder_kernel,
        out_shape=jax.ShapeDtypeStruct((B, 3, HW), jnp.float32),
        grid=(B,),                                   # one step per sample
        in_specs=[
            pl.BlockSpec((pl.Squeezed(), C, T), lambda n: (n, 0, 0)),
            _full_spec(w1), _full_spec(b1), _full_spec(u1),
            _full_spec(w2), _full_spec(b2), _full_spec(u2),
            _full_spec(w3), _full_spec(b3), _full_spec(u3),
            _full_spec(f),
        ],
        out_specs=pl.BlockSpec((pl.Squeezed(), 3, HW), lambda n: (n, 0, 0)),
        compiler_params=pltpu.CompilerParams(
            dimension_semantics=("parallel",)),      # v7x: shard batch over TCs
    )(x_t, w1, b1, u1, w2, b2, u2, w3, b3, u3, f)

    # free metadata reshape: (B, 3, H*W) -> (B, 3, H, W); already NCHW.
    return out_flat.reshape(B, 3, img_h, img_w)


# ---------------- deterministic parameter init (PyTorch-like uniform) ---------
def init_conv(kw, kb, cin, cout):
    fan_in = cin * 9
    bound = 1.0 / (fan_in ** 0.5)
    w = jax.random.uniform(kw, (3, 3, cin, cout), jnp.float32, -bound, bound)
    b = jax.random.uniform(kb, (cout,), jnp.float32, -bound, bound)
    return w, b


# ---------------- pure-JAX reference for validation ---------------------------
def ref_forward(x_tokens, params, img_h, img_w):
    B, T, C = x_tokens.shape
    gh, gw = img_h // 8, img_w // 8
    x = x_tokens.reshape(B, gh, gw, C)
    for (w, b) in params:
        y = lax.conv_general_dilated(
            x, w, window_strides=(1, 1), padding='SAME',
            dimension_numbers=('NHWC', 'HWIO', 'NHWC'))
        x = jnp.maximum(y + b, 0.0)
        x = jnp.repeat(jnp.repeat(x, 2, axis=1), 2, axis=2)
    return jnp.transpose(x, (0, 3, 1, 2))


if __name__ == "__main__":
    B, embed_dim, img_h, img_w = 2, 32, 16, 16
    num_tokens = (img_h * img_w) // 64  # = 4  -> grid 2x2

    key = jax.random.PRNGKey(0)
    kx, k1w, k1b, k2w, k2b, k3w, k3b = jax.random.split(key, 7)
    params = [
        init_conv(k1w, k1b, embed_dim, embed_dim),  # layer1
        init_conv(k2w, k2b, embed_dim, embed_dim),  # layer2
        init_conv(k3w, k3b, embed_dim, 3),          # layer3
    ]
    x = jax.random.normal(kx, (B, num_tokens, embed_dim), jnp.float32)

    fwd = jax.jit(cnn_decoder_forward, static_argnums=(2, 3, 4))

    # f32 path: strict check vs. pure-JAX reference.
    out = jax.block_until_ready(fwd(x, params, img_h, img_w, jnp.float32))
    assert out.shape == (B, 3, img_h, img_w), out.shape
    ref = ref_forward(x, params, img_h, img_w)
    err = float(jnp.max(jnp.abs(out - ref)))
    assert jnp.allclose(out, ref, atol=1e-4, rtol=1e-4), err

    # bf16-operand / f32-accumulation path (MXU-native on v6e/v7x): loose check.
    out_bf16 = jax.block_until_ready(fwd(x, params, img_h, img_w, jnp.bfloat16))
    err_bf16 = float(jnp.max(jnp.abs(out_bf16 - ref)))
    assert err_bf16 < 0.25, err_bf16

    print("KERNEL_OK")
</pallas_src>

<mosaic_0001>
module attributes {stable_mosaic.version = 11 : i64} {
  func.func @_decoder_kernel(%arg0: i32, %arg1: memref<1x32x4xf32, #tpu.memory_space<vmem>>, %arg2: memref<9x32x32xf32, #tpu.memory_space<vmem>>, %arg3: memref<32x1xf32, #tpu.memory_space<vmem>>, %arg4: memref<9x4x8xf32, #tpu.memory_space<vmem>>, %arg5: memref<9x32x32xf32, #tpu.memory_space<vmem>>, %arg6: memref<32x1xf32, #tpu.memory_space<vmem>>, %arg7: memref<9x8x24xf32, #tpu.memory_space<vmem>>, %arg8: memref<9x3x32xf32, #tpu.memory_space<vmem>>, %arg9: memref<3x1xf32, #tpu.memory_space<vmem>>, %arg10: memref<9x24x80xf32, #tpu.memory_space<vmem>>, %arg11: memref<80x256xf32, #tpu.memory_space<vmem>>, %arg12: memref<1x3x256xf32, #tpu.memory_space<vmem>>) attributes {dimension_semantics = [#tpu.dimension_semantics<parallel>], iteration_bounds = array<i64: 2>, scalar_prefetch = 0 : i64, scratch_operands = 0 : i64, tpu.core_type = #tpu.core_type<tc>, window_params = [{transform_indices = @transform_0, window_bounds = array<i64: 1, 32, 4>}, {pipeline_mode = #tpu.pipeline_mode<synchronous>, transform_indices = @transform_1, window_bounds = array<i64: 9, 32, 32>}, {pipeline_mode = #tpu.pipeline_mode<synchronous>, transform_indices = @transform_2, window_bounds = array<i64: 32, 1>}, {pipeline_mode = #tpu.pipeline_mode<synchronous>, transform_indices = @transform_3, window_bounds = array<i64: 9, 4, 8>}, {pipeline_mode = #tpu.pipeline_mode<synchronous>, transform_indices = @transform_4, window_bounds = array<i64: 9, 32, 32>}, {pipeline_mode = #tpu.pipeline_mode<synchronous>, transform_indices = @transform_5, window_bounds = array<i64: 32, 1>}, {pipeline_mode = #tpu.pipeline_mode<synchronous>, transform_indices = @transform_6, window_bounds = array<i64: 9, 8, 24>}, {pipeline_mode = #tpu.pipeline_mode<synchronous>, transform_indices = @transform_7, window_bounds = array<i64: 9, 3, 32>}, {pipeline_mode = #tpu.pipeline_mode<synchronous>, transform_indices = @transform_8, window_bounds = array<i64: 3, 1>}, {pipeline_mode = #tpu.pipeline_mode<synchronous>, transform_indices = @transform_9, window_bounds = array<i64: 9, 24, 80>}, {pipeline_mode = #tpu.pipeline_mode<synchronous>, transform_indices = @transform_10, window_bounds = array<i64: 80, 256>}, {transform_indices = @transform_11, window_bounds = array<i64: 1, 3, 256>}]} {
    %c0 = arith.constant 0 : index
    %c0_0 = arith.constant 0 : index
    %c0_1 = arith.constant 0 : index
    %0 = vector.load %arg1[%c0, %c0_0, %c0_1] : memref<1x32x4xf32, #tpu.memory_space<vmem>>, vector<1x32x4xf32>
    %1 = vector.shape_cast %0 : vector<1x32x4xf32> to vector<32x4xf32>
    %c0_2 = arith.constant 0 : index
    %c0_3 = arith.constant 0 : index
    %c0_4 = arith.constant 0 : index
    %2 = vector.load %arg4[%c0_2, %c0_3, %c0_4] : memref<9x4x8xf32, #tpu.memory_space<vmem>>, vector<1x4x8xf32>
    %3 = vector.shape_cast %2 : vector<1x4x8xf32> to vector<4x8xf32>
    %cst = arith.constant dense<0.000000e+00> : vector<32x8xf32>
    %4 = tpu.matmul %1, %3, %cst {dimension_numbers = #tpu.dot_dimension_numbers<[1], [0], [0], [1], [0, 0, 1, 1], [], []>} : vector<32x4xf32>, vector<4x8xf32>, vector<32x8xf32> -> vector<32x8xf32>
    %c0_5 = arith.constant 0 : index
    %c0_6 = arith.constant 0 : index
    %c0_7 = arith.constant 0 : index
    %5 = vector.load %arg2[%c0_5, %c0_6, %c0_7] : memref<9x32x32xf32, #tpu.memory_space<vmem>>, vector<1x32x32xf32>
    %6 = vector.shape_cast %5 : vector<1x32x32xf32> to vector<32x32xf32>
    %cst_8 = arith.constant dense<0.000000e+00> : vector<32x8xf32>
    %7 = tpu.matmul %6, %4, %cst_8 {dimension_numbers = #tpu.dot_dimension_numbers<[1], [0], [0], [1], [0, 0, 1, 1], [], []>} : vector<32x32xf32>, vector<32x8xf32>, vector<32x8xf32> -> vector<32x8xf32>
    %c1 = arith.constant 1 : index
    %c0_9 = arith.constant 0 : index
    %c0_10 = arith.constant 0 : index
    %8 = vector.load %arg4[%c1, %c0_9, %c0_10] : memref<9x4x8xf32, #tpu.memory_space<vmem>>, vector<1x4x8xf32>
    %9 = vector.shape_cast %8 : vector<1x4x8xf32> to vector<4x8xf32>
    %cst_11 = arith.constant dense<0.000000e+00> : vector<32x8xf32>
    %10 = tpu.matmul %1, %9, %cst_11 {dimension_numbers = #tpu.dot_dimension_numbers<[1], [0], [0], [1], [0, 0, 1, 1], [], []>} : vector<32x4xf32>, vector<4x8xf32>, vector<32x8xf32> -> vector<32x8xf32>
    %c1_12 = arith.constant 1 : index
    %c0_13 = arith.constant 0 : index
    %c0_14 = arith.constant 0 : index
    %11 = vector.load %arg2[%c1_12, %c0_13, %c0_14] : memref<9x32x32xf32, #tpu.memory_space<vmem>>, vector<1x32x32xf32>
    %12 = vector.shape_cast %11 : vector<1x32x32xf32> to vector<32x32xf32>
    %cst_15 = arith.constant dense<0.000000e+00> : vector<32x8xf32>
    %13 = tpu.matmul %12, %10, %cst_15 {dimension_numbers = #tpu.dot_dimension_numbers<[1], [0], [0], [1], [0, 0, 1, 1], [], []>} : vector<32x32xf32>, vector<32x8xf32>, vector<32x8xf32> -> vector<32x8xf32>
    %14 = arith.addf %7, %13 : vector<32x8xf32>
    %c2 = arith.constant 2 : index
    %c0_16 = arith.constant 0 : index
    %c0_17 = arith.constant 0 : index
    %15 = vector.load %arg4[%c2, %c0_16, %c0_17] : memref<9x4x8xf32, #tpu.memory_space<vmem>>, vector<1x4x8xf32>
    %16 = vector.shape_cast %15 : vector<1x4x8xf32> to vector<4x8xf32>
    %cst_18 = arith.constant dense<0.000000e+00> : vector<32x8xf32>
    %17 = tpu.matmul %1, %16, %cst_18 {dimension_numbers = #tpu.dot_dimension_numbers<[1], [0], [0], [1], [0, 0, 1, 1], [], []>} : vector<32x4xf32>, vector<4x8xf32>, vector<32x8xf32> -> vector<32x8xf32>
    %c2_19 = arith.constant 2 : index
    %c0_20 = arith.constant 0 : index
    %c0_21 = arith.constant 0 : index
    %18 = vector.load %arg2[%c2_19, %c0_20, %c0_21] : memref<9x32x32xf32, #tpu.memory_space<vmem>>, vector<1x32x32xf32>
    %19 = vector.shape_cast %18 : vector<1x32x32xf32> to vector<32x32xf32>
    %cst_22 = arith.constant dense<0.000000e+00> : vector<32x8xf32>
    %20 = tpu.matmul %19, %17, %cst_22 {dimension_numbers = #tpu.dot_dimension_numbers<[1], [0], [0], [1], [0, 0, 1, 1], [], []>} : vector<32x32xf32>, vector<32x8xf32>, vector<32x8xf32> -> vector<32x8xf32>
    %21 = arith.addf %14, %20 : vector<32x8xf32>
    %c3 = arith.constant 3 : index
    %c0_23 = arith.constant 0 : index
    %c0_24 = arith.constant 0 : index
    %22 = vector.load %arg4[%c3, %c0_23, %c0_24] : memref<9x4x8xf32, #tpu.memory_space<vmem>>, vector<1x4x8xf32>
    %23 = vector.shape_cast %22 : vector<1x4x8xf32> to vector<4x8xf32>
    %cst_25 = arith.constant dense<0.000000e+00> : vector<32x8xf32>
    %24 = tpu.matmul %1, %23, %cst_25 {dimension_numbers = #tpu.dot_dimension_numbers<[1], [0], [0], [1], [0, 0, 1, 1], [], []>} : vector<32x4xf32>, vector<4x8xf32>, vector<32x8xf32> -> vector<32x8xf32>
    %c3_26 = arith.constant 3 : index
    %c0_27 = arith.constant 0 : index
    %c0_28 = arith.constant 0 : index
    %25 = vector.load %arg2[%c3_26, %c0_27, %c0_28] : memref<9x32x32xf32, #tpu.memory_space<vmem>>, vector<1x32x32xf32>
    %26 = vector.shape_cast %25 : vector<1x32x32xf32> to vector<32x32xf32>
    %cst_29 = arith.constant dense<0.000000e+00> : vector<32x8xf32>
    %27 = tpu.matmul %26, %24, %cst_29 {dimension_numbers = #tpu.dot_dimension_numbers<[1], [0], [0], [1], [0, 0, 1, 1], [], []>} : vector<32x32xf32>, vector<32x8xf32>, vector<32x8xf32> -> vector<32x8xf32>
    %28 = arith.addf %21, %27 : vector<32x8xf32>
    %c4 = arith.constant 4 : index
    %c0_30 = arith.constant 0 : index
    %c0_31 = arith.constant 0 : index
    %29 = vector.load %arg4[%c4, %c0_30, %c0_31] : memref<9x4x8xf32, #tpu.memory_space<vmem>>, vector<1x4x8xf32>
    %30 = vector.shape_cast %29 : vector<1x4x8xf32> to vector<4x8xf32>
    %cst_32 = arith.constant dense<0.000000e+00> : vector<32x8xf32>
    %31 = tpu.matmul %1, %30, %cst_32 {dimension_numbers = #tpu.dot_dimension_numbers<[1], [0], [0], [1], [0, 0, 1, 1], [], []>} : vector<32x4xf32>, vector<4x8xf32>, vector<32x8xf32> -> vector<32x8xf32>
    %c4_33 = arith.constant 4 : index
    %c0_34 = arith.constant 0 : index
    %c0_35 = arith.constant 0 : index
    %32 = vector.load %arg2[%c4_33, %c0_34, %c0_35] : memref<9x32x32xf32, #tpu.memory_space<vmem>>, vector<1x32x32xf32>
    %33 = vector.shape_cast %32 : vector<1x32x32xf32> to vector<32x32xf32>
    %cst_36 = arith.constant dense<0.000000e+00> : vector<32x8xf32>
    %34 = tpu.matmul %33, %31, %cst_36 {dimension_numbers = #tpu.dot_dimension_numbers<[1], [0], [0], [1], [0, 0, 1, 1], [], []>} : vector<32x32xf32>, vector<32x8xf32>, vector<32x8xf32> -> vector<32x8xf32>
    %35 = arith.addf %28, %34 : vector<32x8xf32>
    %c5 = arith.constant 5 : index
    %c0_37 = arith.constant 0 : index
    %c0_38 = arith.constant 0 : index
    %36 = vector.load %arg4[%c5, %c0_37, %c0_38] : memref<9x4x8xf32, #tpu.memory_space<vmem>>, vector<1x4x8xf32>
    %37 = vector.shape_cast %36 : vector<1x4x8xf32> to vector<4x8xf32>
    %cst_39 = arith.constant dense<0.000000e+00> : vector<32x8xf32>
    %38 = tpu.matmul %1, %37, %cst_39 {dimension_numbers = #tpu.dot_dimension_numbers<[1], [0], [0], [1], [0, 0, 1, 1], [], []>} : vector<32x4xf32>, vector<4x8xf32>, vector<32x8xf32> -> vector<32x8xf32>
    %c5_40 = arith.constant 5 : index
    %c0_41 = arith.constant 0 : index
    %c0_42 = arith.constant 0 : index
    %39 = vector.load %arg2[%c5_40, %c0_41, %c0_42] : memref<9x32x32xf32, #tpu.memory_space<vmem>>, vector<1x32x32xf32>
    %40 = vector.shape_cast %39 : vector<1x32x32xf32> to vector<32x32xf32>
    %cst_43 = arith.constant dense<0.000000e+00> : vector<32x8xf32>
    %41 = tpu.matmul %40, %38, %cst_43 {dimension_numbers = #tpu.dot_dimension_numbers<[1], [0], [0], [1], [0, 0, 1, 1], [], []>} : vector<32x32xf32>, vector<32x8xf32>, vector<32x8xf32> -> vector<32x8xf32>
    %42 = arith.addf %35, %41 : vector<32x8xf32>
    %c6 = arith.constant 6 : index
    %c0_44 = arith.constant 0 : index
    %c0_45 = arith.constant 0 : index
    %43 = vector.load %arg4[%c6, %c0_44, %c0_45] : memref<9x4x8xf32, #tpu.memory_space<vmem>>, vector<1x4x8xf32>
    %44 = vector.shape_cast %43 : vector<1x4x8xf32> to vector<4x8xf32>
    %cst_46 = arith.constant dense<0.000000e+00> : vector<32x8xf32>
    %45 = tpu.matmul %1, %44, %cst_46 {dimension_numbers = #tpu.dot_dimension_numbers<[1], [0], [0], [1], [0, 0, 1, 1], [], []>} : vector<32x4xf32>, vector<4x8xf32>, vector<32x8xf32> -> vector<32x8xf32>
    %c6_47 = arith.constant 6 : index
    %c0_48 = arith.constant 0 : index
    %c0_49 = arith.constant 0 : index
    %46 = vector.load %arg2[%c6_47, %c0_48, %c0_49] : memref<9x32x32xf32, #tpu.memory_space<vmem>>, vector<1x32x32xf32>
    %47 = vector.shape_cast %46 : vector<1x32x32xf32> to vector<32x32xf32>
    %cst_50 = arith.constant dense<0.000000e+00> : vector<32x8xf32>
    %48 = tpu.matmul %47, %45, %cst_50 {dimension_numbers = #tpu.dot_dimension_numbers<[1], [0], [0], [1], [0, 0, 1, 1], [], []>} : vector<32x32xf32>, vector<32x8xf32>, vector<32x8xf32> -> vector<32x8xf32>
    %49 = arith.addf %42, %48 : vector<32x8xf32>
    %c7 = arith.constant 7 : index
    %c0_51 = arith.constant 0 : index
    %c0_52 = arith.constant 0 : index
    %50 = vector.load %arg4[%c7, %c0_51, %c0_52] : memref<9x4x8xf32, #tpu.memory_space<vmem>>, vector<1x4x8xf32>
    %51 = vector.shape_cast %50 : vector<1x4x8xf32> to vector<4x8xf32>
    %cst_53 = arith.constant dense<0.000000e+00> : vector<32x8xf32>
    %52 = tpu.matmul %1, %51, %cst_53 {dimension_numbers = #tpu.dot_dimension_numbers<[1], [0], [0], [1], [0, 0, 1, 1], [], []>} : vector<32x4xf32>, vector<4x8xf32>, vector<32x8xf32> -> vector<32x8xf32>
    %c7_54 = arith.constant 7 : index
    %c0_55 = arith.constant 0 : index
    %c0_56 = arith.constant 0 : index
    %53 = vector.load %arg2[%c7_54, %c0_55, %c0_56] : memref<9x32x32xf32, #tpu.memory_space<vmem>>, vector<1x32x32xf32>
    %54 = vector.shape_cast %53 : vector<1x32x32xf32> to vector<32x32xf32>
    %cst_57 = arith.constant dense<0.000000e+00> : vector<32x8xf32>
    %55 = tpu.matmul %54, %52, %cst_57 {dimension_numbers = #tpu.dot_dimension_numbers<[1], [0], [0], [1], [0, 0, 1, 1], [], []>} : vector<32x32xf32>, vector<32x8xf32>, vector<32x8xf32> -> vector<32x8xf32>
    %56 = arith.addf %49, %55 : vector<32x8xf32>
    %c8 = arith.constant 8 : index
    %c0_58 = arith.constant 0 : index
    %c0_59 = arith.constant 0 : index
    %57 = vector.load %arg4[%c8, %c0_58, %c0_59] : memref<9x4x8xf32, #tpu.memory_space<vmem>>, vector<1x4x8xf32>
    %58 = vector.shape_cast %57 : vector<1x4x8xf32> to vector<4x8xf32>
    %cst_60 = arith.constant dense<0.000000e+00> : vector<32x8xf32>
    %59 = tpu.matmul %1, %58, %cst_60 {dimension_numbers = #tpu.dot_dimension_numbers<[1], [0], [0], [1], [0, 0, 1, 1], [], []>} : vector<32x4xf32>, vector<4x8xf32>, vector<32x8xf32> -> vector<32x8xf32>
    %c8_61 = arith.constant 8 : index
    %c0_62 = arith.constant 0 : index
    %c0_63 = arith.constant 0 : index
    %60 = vector.load %arg2[%c8_61, %c0_62, %c0_63] : memref<9x32x32xf32, #tpu.memory_space<vmem>>, vector<1x32x32xf32>
    %61 = vector.shape_cast %60 : vector<1x32x32xf32> to vector<32x32xf32>
    %cst_64 = arith.constant dense<0.000000e+00> : vector<32x8xf32>
    %62 = tpu.matmul %61, %59, %cst_64 {dimension_numbers = #tpu.dot_dimension_numbers<[1], [0], [0], [1], [0, 0, 1, 1], [], []>} : vector<32x32xf32>, vector<32x8xf32>, vector<32x8xf32> -> vector<32x8xf32>
    %63 = arith.addf %56, %62 : vector<32x8xf32>
    %c0_65 = arith.constant 0 : index
    %c0_66 = arith.constant 0 : index
    %64 = vector.load %arg3[%c0_65, %c0_66] : memref<32x1xf32, #tpu.memory_space<vmem>>, vector<32x1xf32>
    %65 = vector.broadcast %64 : vector<32x1xf32> to vector<32x8xf32>
    %66 = arith.addf %63, %65 : vector<32x8xf32>
    %cst_67 = arith.constant 0.000000e+00 : f32
    %67 = vector.broadcast %cst_67 : f32 to vector<32x8xf32>
    %68 = arith.maximumf %66, %67 : vector<32x8xf32>
    %c0_68 = arith.constant 0 : index
    %c0_69 = arith.constant 0 : index
    %c0_70 = arith.constant 0 : index
    %69 = vector.load %arg7[%c0_68, %c0_69, %c0_70] : memref<9x8x24xf32, #tpu.memory_space<vmem>>, vector<1x8x24xf32>
    %70 = vector.shape_cast %69 : vector<1x8x24xf32> to vector<8x24xf32>
    %cst_71 = arith.constant dense<0.000000e+00> : vector<32x24xf32>
    %71 = tpu.matmul %68, %70, %cst_71 {dimension_numbers = #tpu.dot_dimension_numbers<[1], [0], [0], [1], [0, 0, 1, 1], [], []>} : vector<32x8xf32>, vector<8x24xf32>, vector<32x24xf32> -> vector<32x24xf32>
    %c0_72 = arith.constant 0 : index
    %c0_73 = arith.constant 0 : index
    %c0_74 = arith.constant 0 : index
    %72 = vector.load %arg5[%c0_72, %c0_73, %c0_74] : memref<9x32x32xf32, #tpu.memory_space<vmem>>, vector<1x32x32xf32>
    %73 = vector.shape_cast %72 : vector<1x32x32xf32> to vector<32x32xf32>
    %cst_75 = arith.constant dense<0.000000e+00> : vector<32x24xf32>
    %74 = tpu.matmul %73, %71, %cst_75 {dimension_numbers = #tpu.dot_dimension_numbers<[1], [0], [0], [1], [0, 0, 1, 1], [], []>} : vector<32x32xf32>, vector<32x24xf32>, vector<32x24xf32> -> vector<32x24xf32>
    %c1_76 = arith.constant 1 : index
    %c0_77 = arith.constant 0 : index
    %c0_78 = arith.constant 0 : index
    %75 = vector.load %arg7[%c1_76, %c0_77, %c0_78] : memref<9x8x24xf32, #tpu.memory_space<vmem>>, vector<1x8x24xf32>
    %76 = vector.shape_cast %75 : vector<1x8x24xf32> to vector<8x24xf32>
    %cst_79 = arith.constant dense<0.000000e+00> : vector<32x24xf32>
    %77 = tpu.matmul %68, %76, %cst_79 {dimension_numbers = #tpu.dot_dimension_numbers<[1], [0], [0], [1], [0, 0, 1, 1], [], []>} : vector<32x8xf32>, vector<8x24xf32>, vector<32x24xf32> -> vector<32x24xf32>
    %c1_80 = arith.constant 1 : index
    %c0_81 = arith.constant 0 : index
    %c0_82 = arith.constant 0 : index
    %78 = vector.load %arg5[%c1_80, %c0_81, %c0_82] : memref<9x32x32xf32, #tpu.memory_space<vmem>>, vector<1x32x32xf32>
    %79 = vector.shape_cast %78 : vector<1x32x32xf32> to vector<32x32xf32>
    %cst_83 = arith.constant dense<0.000000e+00> : vector<32x24xf32>
    %80 = tpu.matmul %79, %77, %cst_83 {dimension_numbers = #tpu.dot_dimension_numbers<[1], [0], [0], [1], [0, 0, 1, 1], [], []>} : vector<32x32xf32>, vector<32x24xf32>, vector<32x24xf32> -> vector<32x24xf32>
    %81 = arith.addf %74, %80 : vector<32x24xf32>
    %c2_84 = arith.constant 2 : index
    %c0_85 = arith.constant 0 : index
    %c0_86 = arith.constant 0 : index
    %82 = vector.load %arg7[%c2_84, %c0_85, %c0_86] : memref<9x8x24xf32, #tpu.memory_space<vmem>>, vector<1x8x24xf32>
    %83 = vector.shape_cast %82 : vector<1x8x24xf32> to vector<8x24xf32>
    %cst_87 = arith.constant dense<0.000000e+00> : vector<32x24xf32>
    %84 = tpu.matmul %68, %83, %cst_87 {dimension_numbers = #tpu.dot_dimension_numbers<[1], [0], [0], [1], [0, 0, 1, 1], [], []>} : vector<32x8xf32>, vector<8x24xf32>, vector<32x24xf32> -> vector<32x24xf32>
    %c2_88 = arith.constant 2 : index
    %c0_89 = arith.constant 0 : index
    %c0_90 = arith.constant 0 : index
    %85 = vector.load %arg5[%c2_88, %c0_89, %c0_90] : memref<9x32x32xf32, #tpu.memory_space<vmem>>, vector<1x32x32xf32>
    %86 = vector.shape_cast %85 : vector<1x32x32xf32> to vector<32x32xf32>
    %cst_91 = arith.constant dense<0.000000e+00> : vector<32x24xf32>
    %87 = tpu.matmul %86, %84, %cst_91 {dimension_numbers = #tpu.dot_dimension_numbers<[1], [0], [0], [1], [0, 0, 1, 1], [], []>} : vector<32x32xf32>, vector<32x24xf32>, vector<32x24xf32> -> vector<32x24xf32>
    %88 = arith.addf %81, %87 : vector<32x24xf32>
    %c3_92 = arith.constant 3 : index
    %c0_93 = arith.constant 0 : index
    %c0_94 = arith.constant 0 : index
    %89 = vector.load %arg7[%c3_92, %c0_93, %c0_94] : memref<9x8x24xf32, #tpu.memory_space<vmem>>, vector<1x8x24xf32>
    %90 = vector.shape_cast %89 : vector<1x8x24xf32> to vector<8x24xf32>
    %cst_95 = arith.constant dense<0.000000e+00> : vector<32x24xf32>
    %91 = tpu.matmul %68, %90, %cst_95 {dimension_numbers = #tpu.dot_dimension_numbers<[1], [0], [0], [1], [0, 0, 1, 1], [], []>} : vector<32x8xf32>, vector<8x24xf32>, vector<32x24xf32> -> vector<32x24xf32>
    %c3_96 = arith.constant 3 : index
    %c0_97 = arith.constant 0 : index
    %c0_98 = arith.constant 0 : index
    %92 = vector.load %arg5[%c3_96, %c0_97, %c0_98] : memref<9x32x32xf32, #tpu.memory_space<vmem>>, vector<1x32x32xf32>
    %93 = vector.shape_cast %92 : vector<1x32x32xf32> to vector<32x32xf32>
    %cst_99 = arith.constant dense<0.000000e+00> : vector<32x24xf32>
    %94 = tpu.matmul %93, %91, %cst_99 {dimension_numbers = #tpu.dot_dimension_numbers<[1], [0], [0], [1], [0, 0, 1, 1], [], []>} : vector<32x32xf32>, vector<32x24xf32>, vector<32x24xf32> -> vector<32x24xf32>
    %95 = arith.addf %88, %94 : vector<32x24xf32>
    %c4_100 = arith.constant 4 : index
    %c0_101 = arith.constant 0 : index
    %c0_102 = arith.constant 0 : index
    %96 = vector.load %arg7[%c4_100, %c0_101, %c0_102] : memref<9x8x24xf32, #tpu.memory_space<vmem>>, vector<1x8x24xf32>
    %97 = vector.shape_cast %96 : vector<1x8x24xf32> to vector<8x24xf32>
    %cst_103 = arith.constant dense<0.000000e+00> : vector<32x24xf32>
    %98 = tpu.matmul %68, %97, %cst_103 {dimension_numbers = #tpu.dot_dimension_numbers<[1], [0], [0], [1], [0, 0, 1, 1], [], []>} : vector<32x8xf32>, vector<8x24xf32>, vector<32x24xf32> -> vector<32x24xf32>
    %c4_104 = arith.constant 4 : index
    %c0_105 = arith.constant 0 : index
    %c0_106 = arith.constant 0 : index
    %99 = vector.load %arg5[%c4_104, %c0_105, %c0_106] : memref<9x32x32xf32, #tpu.memory_space<vmem>>, vector<1x32x32xf32>
    %100 = vector.shape_cast %99 : vector<1x32x32xf32> to vector<32x32xf32>
    %cst_107 = arith.constant dense<0.000000e+00> : vector<32x24xf32>
    %101 = tpu.matmul %100, %98, %cst_107 {dimension_numbers = #tpu.dot_dimension_numbers<[1], [0], [0], [1], [0, 0, 1, 1], [], []>} : vector<32x32xf32>, vector<32x24xf32>, vector<32x24xf32> -> vector<32x24xf32>
    %102 = arith.addf %95, %101 : vector<32x24xf32>
    %c5_108 = arith.constant 5 : index
    %c0_109 = arith.constant 0 : index
    %c0_110 = arith.constant 0 : index
    %103 = vector.load %arg7[%c5_108, %c0_109, %c0_110] : memref<9x8x24xf32, #tpu.memory_space<vmem>>, vector<1x8x24xf32>
    %104 = vector.shape_cast %103 : vector<1x8x24xf32> to vector<8x24xf32>
    %cst_111 = arith.constant dense<0.000000e+00> : vector<32x24xf32>
    %105 = tpu.matmul %68, %104, %cst_111 {dimension_numbers = #tpu.dot_dimension_numbers<[1], [0], [0], [1], [0, 0, 1, 1], [], []>} : vector<32x8xf32>, vector<8x24xf32>, vector<32x24xf32> -> vector<32x24xf32>
    %c5_112 = arith.constant 5 : index
    %c0_113 = arith.constant 0 : index
    %c0_114 = arith.constant 0 : index
    %106 = vector.load %arg5[%c5_112, %c0_113, %c0_114] : memref<9x32x32xf32, #tpu.memory_space<vmem>>, vector<1x32x32xf32>
    %107 = vector.shape_cast %106 : vector<1x32x32xf32> to vector<32x32xf32>
    %cst_115 = arith.constant dense<0.000000e+00> : vector<32x24xf32>
    %108 = tpu.matmul %107, %105, %cst_115 {dimension_numbers = #tpu.dot_dimension_numbers<[1], [0], [0], [1], [0, 0, 1, 1], [], []>} : vector<32x32xf32>, vector<32x24xf32>, vector<32x24xf32> -> vector<32x24xf32>
    %109 = arith.addf %102, %108 : vector<32x24xf32>
    %c6_116 = arith.constant 6 : index
    %c0_117 = arith.constant 0 : index
    %c0_118 = arith.constant 0 : index
    %110 = vector.load %arg7[%c6_116, %c0_117, %c0_118] : memref<9x8x24xf32, #tpu.memory_space<vmem>>, vector<1x8x24xf32>
    %111 = vector.shape_cast %110 : vector<1x8x24xf32> to vector<8x24xf32>
    %cst_119 = arith.constant dense<0.000000e+00> : vector<32x24xf32>
    %112 = tpu.matmul %68, %111, %cst_119 {dimension_numbers = #tpu.dot_dimension_numbers<[1], [0], [0], [1], [0, 0, 1, 1], [], []>} : vector<32x8xf32>, vector<8x24xf32>, vector<32x24xf32> -> vector<32x24xf32>
    %c6_120 = arith.constant 6 : index
    %c0_121 = arith.constant 0 : index
    %c0_122 = arith.constant 0 : index
    %113 = vector.load %arg5[%c6_120, %c0_121, %c0_122] : memref<9x32x32xf32, #tpu.memory_space<vmem>>, vector<1x32x32xf32>
    %114 = vector.shape_cast %113 : vector<1x32x32xf32> to vector<32x32xf32>
    %cst_123 = arith.constant dense<0.000000e+00> : vector<32x24xf32>
    %115 = tpu.matmul %114, %112, %cst_123 {dimension_numbers = #tpu.dot_dimension_numbers<[1], [0], [0], [1], [0, 0, 1, 1], [], []>} : vector<32x32xf32>, vector<32x24xf32>, vector<32x24xf32> -> vector<32x24xf32>
    %116 = arith.addf %109, %115 : vector<32x24xf32>
    %c7_124 = arith.constant 7 : index
    %c0_125 = arith.constant 0 : index
    %c0_126 = arith.constant 0 : index
    %117 = vector.load %arg7[%c7_124, %c0_125, %c0_126] : memref<9x8x24xf32, #tpu.memory_space<vmem>>, vector<1x8x24xf32>
    %118 = vector.shape_cast %117 : vector<1x8x24xf32> to vector<8x24xf32>
    %cst_127 = arith.constant dense<0.000000e+00> : vector<32x24xf32>
    %119 = tpu.matmul %68, %118, %cst_127 {dimension_numbers = #tpu.dot_dimension_numbers<[1], [0], [0], [1], [0, 0, 1, 1], [], []>} : vector<32x8xf32>, vector<8x24xf32>, vector<32x24xf32> -> vector<32x24xf32>
    %c7_128 = arith.constant 7 : index
    %c0_129 = arith.constant 0 : index
    %c0_130 = arith.constant 0 : index
    %120 = vector.load %arg5[%c7_128, %c0_129, %c0_130] : memref<9x32x32xf32, #tpu.memory_space<vmem>>, vector<1x32x32xf32>
    %121 = vector.shape_cast %120 : vector<1x32x32xf32> to vector<32x32xf32>
    %cst_131 = arith.constant dense<0.000000e+00> : vector<32x24xf32>
    %122 = tpu.matmul %121, %119, %cst_131 {dimension_numbers = #tpu.dot_dimension_numbers<[1], [0], [0], [1], [0, 0, 1, 1], [], []>} : vector<32x32xf32>, vector<32x24xf32>, vector<32x24xf32> -> vector<32x24xf32>
    %123 = arith.addf %116, %122 : vector<32x24xf32>
    %c8_132 = arith.constant 8 : index
    %c0_133 = arith.constant 0 : index
    %c0_134 = arith.constant 0 : index
    %124 = vector.load %arg7[%c8_132, %c0_133, %c0_134] : memref<9x8x24xf32, #tpu.memory_space<vmem>>, vector<1x8x24xf32>
    %125 = vector.shape_cast %124 : vector<1x8x24xf32> to vector<8x24xf32>
    %cst_135 = arith.constant dense<0.000000e+00> : vector<32x24xf32>
    %126 = tpu.matmul %68, %125, %cst_135 {dimension_numbers = #tpu.dot_dimension_numbers<[1], [0], [0], [1], [0, 0, 1, 1], [], []>} : vector<32x8xf32>, vector<8x24xf32>, vector<32x24xf32> -> vector<32x24xf32>
    %c8_136 = arith.constant 8 : index
    %c0_137 = arith.constant 0 : index
    %c0_138 = arith.constant 0 : index
    %127 = vector.load %arg5[%c8_136, %c0_137, %c0_138] : memref<9x32x32xf32, #tpu.memory_space<vmem>>, vector<1x32x32xf32>
    %128 = vector.shape_cast %127 : vector<1x32x32xf32> to vector<32x32xf32>
    %cst_139 = arith.constant dense<0.000000e+00> : vector<32x24xf32>
    %129 = tpu.matmul %128, %126, %cst_139 {dimension_numbers = #tpu.dot_dimension_numbers<[1], [0], [0], [1], [0, 0, 1, 1], [], []>} : vector<32x32xf32>, vector<32x24xf32>, vector<32x24xf32> -> vector<32x24xf32>
    %130 = arith.addf %123, %129 : vector<32x24xf32>
    %c0_140 = arith.constant 0 : index
    %c0_141 = arith.constant 0 : index
    %131 = vector.load %arg6[%c0_140, %c0_141] : memref<32x1xf32, #tpu.memory_space<vmem>>, vector<32x1xf32>
    %132 = vector.broadcast %131 : vector<32x1xf32> to vector<32x24xf32>
    %133 = arith.addf %130, %132 : vector<32x24xf32>
    %cst_142 = arith.constant 0.000000e+00 : f32
    %134 = vector.broadcast %cst_142 : f32 to vector<32x24xf32>
    %135 = arith.maximumf %133, %134 : vector<32x24xf32>
    %c0_143 = arith.constant 0 : index
    %c0_144 = arith.constant 0 : index
    %c0_145 = arith.constant 0 : index
    %136 = vector.load %arg10[%c0_143, %c0_144, %c0_145] : memref<9x24x80xf32, #tpu.memory_space<vmem>>, vector<1x24x80xf32>
    %137 = vector.shape_cast %136 : vector<1x24x80xf32> to vector<24x80xf32>
    %cst_146 = arith.constant dense<0.000000e+00> : vector<32x80xf32>
    %138 = tpu.matmul %135, %137, %cst_146 {dimension_numbers = #tpu.dot_dimension_numbers<[1], [0], [0], [1], [0, 0, 1, 1], [], []>} : vector<32x24xf32>, vector<24x80xf32>, vector<32x80xf32> -> vector<32x80xf32>
    %c0_147 = arith.constant 0 : index
    %c0_148 = arith.constant 0 : index
    %c0_149 = arith.constant 0 : index
    %139 = vector.load %arg8[%c0_147, %c0_148, %c0_149] : memref<9x3x32xf32, #tpu.memory_space<vmem>>, vector<1x3x32xf32>
    %140 = vector.shape_cast %139 : vector<1x3x32xf32> to vector<3x32xf32>
    %cst_150 = arith.constant dense<0.000000e+00> : vector<3x80xf32>
    %141 = tpu.matmul %140, %138, %cst_150 {dimension_numbers = #tpu.dot_dimension_numbers<[1], [0], [0], [1], [0, 0, 1, 1], [], []>} : vector<3x32xf32>, vector<32x80xf32>, vector<3x80xf32> -> vector<3x80xf32>
    %c1_151 = arith.constant 1 : index
    %c0_152 = arith.constant 0 : index
    %c0_153 = arith.constant 0 : index
    %142 = vector.load %arg10[%c1_151, %c0_152, %c0_153] : memref<9x24x80xf32, #tpu.memory_space<vmem>>, vector<1x24x80xf32>
    %143 = vector.shape_cast %142 : vector<1x24x80xf32> to vector<24x80xf32>
    %cst_154 = arith.constant dense<0.000000e+00> : vector<32x80xf32>
    %144 = tpu.matmul %135, %143, %cst_154 {dimension_numbers = #tpu.dot_dimension_numbers<[1], [0], [0], [1], [0, 0, 1, 1], [], []>} : vector<32x24xf32>, vector<24x80xf32>, vector<32x80xf32> -> vector<32x80xf32>
    %c1_155 = arith.constant 1 : index
    %c0_156 = arith.constant 0 : index
    %c0_157 = arith.constant 0 : index
    %145 = vector.load %arg8[%c1_155, %c0_156, %c0_157] : memref<9x3x32xf32, #tpu.memory_space<vmem>>, vector<1x3x32xf32>
    %146 = vector.shape_cast %145 : vector<1x3x32xf32> to vector<3x32xf32>
    %cst_158 = arith.constant dense<0.000000e+00> : vector<3x80xf32>
    %147 = tpu.matmul %146, %144, %cst_158 {dimension_numbers = #tpu.dot_dimension_numbers<[1], [0], [0], [1], [0, 0, 1, 1], [], []>} : vector<3x32xf32>, vector<32x80xf32>, vector<3x80xf32> -> vector<3x80xf32>
    %148 = arith.addf %141, %147 : vector<3x80xf32>
    %c2_159 = arith.constant 2 : index
    %c0_160 = arith.constant 0 : index
    %c0_161 = arith.constant 0 : index
    %149 = vector.load %arg10[%c2_159, %c0_160, %c0_161] : memref<9x24x80xf32, #tpu.memory_space<vmem>>, vector<1x24x80xf32>
    %150 = vector.shape_cast %149 : vector<1x24x80xf32> to vector<24x80xf32>
    %cst_162 = arith.constant dense<0.000000e+00> : vector<32x80xf32>
    %151 = tpu.matmul %135, %150, %cst_162 {dimension_numbers = #tpu.dot_dimension_numbers<[1], [0], [0], [1], [0, 0, 1, 1], [], []>} : vector<32x24xf32>, vector<24x80xf32>, vector<32x80xf32> -> vector<32x80xf32>
    %c2_163 = arith.constant 2 : index
    %c0_164 = arith.constant 0 : index
    %c0_165 = arith.constant 0 : index
    %152 = vector.load %arg8[%c2_163, %c0_164, %c0_165] : memref<9x3x32xf32, #tpu.memory_space<vmem>>, vector<1x3x32xf32>
    %153 = vector.shape_cast %152 : vector<1x3x32xf32> to vector<3x32xf32>
    %cst_166 = arith.constant dense<0.000000e+00> : vector<3x80xf32>
    %154 = tpu.matmul %153, %151, %cst_166 {dimension_numbers = #tpu.dot_dimension_numbers<[1], [0], [0], [1], [0, 0, 1, 1], [], []>} : vector<3x32xf32>, vector<32x80xf32>, vector<3x80xf32> -> vector<3x80xf32>
    %155 = arith.addf %148, %154 : vector<3x80xf32>
    %c3_167 = arith.constant 3 : index
    %c0_168 = arith.constant 0 : index
    %c0_169 = arith.constant 0 : index
    %156 = vector.load %arg10[%c3_167, %c0_168, %c0_169] : memref<9x24x80xf32, #tpu.memory_space<vmem>>, vector<1x24x80xf32>
    %157 = vector.shape_cast %156 : vector<1x24x80xf32> to vector<24x80xf32>
    %cst_170 = arith.constant dense<0.000000e+00> : vector<32x80xf32>
    %158 = tpu.matmul %135, %157, %cst_170 {dimension_numbers = #tpu.dot_dimension_numbers<[1], [0], [0], [1], [0, 0, 1, 1], [], []>} : vector<32x24xf32>, vector<24x80xf32>, vector<32x80xf32> -> vector<32x80xf32>
    %c3_171 = arith.constant 3 : index
    %c0_172 = arith.constant 0 : index
    %c0_173 = arith.constant 0 : index
    %159 = vector.load %arg8[%c3_171, %c0_172, %c0_173] : memref<9x3x32xf32, #tpu.memory_space<vmem>>, vector<1x3x32xf32>
    %160 = vector.shape_cast %159 : vector<1x3x32xf32> to vector<3x32xf32>
    %cst_174 = arith.constant dense<0.000000e+00> : vector<3x80xf32>
    %161 = tpu.matmul %160, %158, %cst_174 {dimension_numbers = #tpu.dot_dimension_numbers<[1], [0], [0], [1], [0, 0, 1, 1], [], []>} : vector<3x32xf32>, vector<32x80xf32>, vector<3x80xf32> -> vector<3x80xf32>
    %162 = arith.addf %155, %161 : vector<3x80xf32>
    %c4_175 = arith.constant 4 : index
    %c0_176 = arith.constant 0 : index
    %c0_177 = arith.constant 0 : index
    %163 = vector.load %arg10[%c4_175, %c0_176, %c0_177] : memref<9x24x80xf32, #tpu.memory_space<vmem>>, vector<1x24x80xf32>
    %164 = vector.shape_cast %163 : vector<1x24x80xf32> to vector<24x80xf32>
    %cst_178 = arith.constant dense<0.000000e+00> : vector<32x80xf32>
    %165 = tpu.matmul %135, %164, %cst_178 {dimension_numbers = #tpu.dot_dimension_numbers<[1], [0], [0], [1], [0, 0, 1, 1], [], []>} : vector<32x24xf32>, vector<24x80xf32>, vector<32x80xf32> -> vector<32x80xf32>
    %c4_179 = arith.constant 4 : index
    %c0_180 = arith.constant 0 : index
    %c0_181 = arith.constant 0 : index
    %166 = vector.load %arg8[%c4_179, %c0_180, %c0_181] : memref<9x3x32xf32, #tpu.memory_space<vmem>>, vector<1x3x32xf32>
    %167 = vector.shape_cast %166 : vector<1x3x32xf32> to vector<3x32xf32>
    %cst_182 = arith.constant dense<0.000000e+00> : vector<3x80xf32>
    %168 = tpu.matmul %167, %165, %cst_182 {dimension_numbers = #tpu.dot_dimension_numbers<[1], [0], [0], [1], [0, 0, 1, 1], [], []>} : vector<3x32xf32>, vector<32x80xf32>, vector<3x80xf32> -> vector<3x80xf32>
    %169 = arith.addf %162, %168 : vector<3x80xf32>
    %c5_183 = arith.constant 5 : index
    %c0_184 = arith.constant 0 : index
    %c0_185 = arith.constant 0 : index
    %170 = vector.load %arg10[%c5_183, %c0_184, %c0_185] : memref<9x24x80xf32, #tpu.memory_space<vmem>>, vector<1x24x80xf32>
    %171 = vector.shape_cast %170 : vector<1x24x80xf32> to vector<24x80xf32>
    %cst_186 = arith.constant dense<0.000000e+00> : vector<32x80xf32>
    %172 = tpu.matmul %135, %171, %cst_186 {dimension_numbers = #tpu.dot_dimension_numbers<[1], [0], [0], [1], [0, 0, 1, 1], [], []>} : vector<32x24xf32>, vector<24x80xf32>, vector<32x80xf32> -> vector<32x80xf32>
    %c5_187 = arith.constant 5 : index
    %c0_188 = arith.constant 0 : index
    %c0_189 = arith.constant 0 : index
    %173 = vector.load %arg8[%c5_187, %c0_188, %c0_189] : memref<9x3x32xf32, #tpu.memory_space<vmem>>, vector<1x3x32xf32>
    %174 = vector.shape_cast %173 : vector<1x3x32xf32> to vector<3x32xf32>
    %cst_190 = arith.constant dense<0.000000e+00> : vector<3x80xf32>
    %175 = tpu.matmul %174, %172, %cst_190 {dimension_numbers = #tpu.dot_dimension_numbers<[1], [0], [0], [1], [0, 0, 1, 1], [], []>} : vector<3x32xf32>, vector<32x80xf32>, vector<3x80xf32> -> vector<3x80xf32>
    %176 = arith.addf %169, %175 : vector<3x80xf32>
    %c6_191 = arith.constant 6 : index
    %c0_192 = arith.constant 0 : index
    %c0_193 = arith.constant 0 : index
    %177 = vector.load %arg10[%c6_191, %c0_192, %c0_193] : memref<9x24x80xf32, #tpu.memory_space<vmem>>, vector<1x24x80xf32>
    %178 = vector.shape_cast %177 : vector<1x24x80xf32> to vector<24x80xf32>
    %cst_194 = arith.constant dense<0.000000e+00> : vector<32x80xf32>
    %179 = tpu.matmul %135, %178, %cst_194 {dimension_numbers = #tpu.dot_dimension_numbers<[1], [0], [0], [1], [0, 0, 1, 1], [], []>} : vector<32x24xf32>, vector<24x80xf32>, vector<32x80xf32> -> vector<32x80xf32>
    %c6_195 = arith.constant 6 : index
    %c0_196 = arith.constant 0 : index
    %c0_197 = arith.constant 0 : index
    %180 = vector.load %arg8[%c6_195, %c0_196, %c0_197] : memref<9x3x32xf32, #tpu.memory_space<vmem>>, vector<1x3x32xf32>
    %181 = vector.shape_cast %180 : vector<1x3x32xf32> to vector<3x32xf32>
    %cst_198 = arith.constant dense<0.000000e+00> : vector<3x80xf32>
    %182 = tpu.matmul %181, %179, %cst_198 {dimension_numbers = #tpu.dot_dimension_numbers<[1], [0], [0], [1], [0, 0, 1, 1], [], []>} : vector<3x32xf32>, vector<32x80xf32>, vector<3x80xf32> -> vector<3x80xf32>
    %183 = arith.addf %176, %182 : vector<3x80xf32>
    %c7_199 = arith.constant 7 : index
    %c0_200 = arith.constant 0 : index
    %c0_201 = arith.constant 0 : index
    %184 = vector.load %arg10[%c7_199, %c0_200, %c0_201] : memref<9x24x80xf32, #tpu.memory_space<vmem>>, vector<1x24x80xf32>
    %185 = vector.shape_cast %184 : vector<1x24x80xf32> to vector<24x80xf32>
    %cst_202 = arith.constant dense<0.000000e+00> : vector<32x80xf32>
    %186 = tpu.matmul %135, %185, %cst_202 {dimension_numbers = #tpu.dot_dimension_numbers<[1], [0], [0], [1], [0, 0, 1, 1], [], []>} : vector<32x24xf32>, vector<24x80xf32>, vector<32x80xf32> -> vector<32x80xf32>
    %c7_203 = arith.constant 7 : index
    %c0_204 = arith.constant 0 : index
    %c0_205 = arith.constant 0 : index
    %187 = vector.load %arg8[%c7_203, %c0_204, %c0_205] : memref<9x3x32xf32, #tpu.memory_space<vmem>>, vector<1x3x32xf32>
    %188 = vector.shape_cast %187 : vector<1x3x32xf32> to vector<3x32xf32>
    %cst_206 = arith.constant dense<0.000000e+00> : vector<3x80xf32>
    %189 = tpu.matmul %188, %186, %cst_206 {dimension_numbers = #tpu.dot_dimension_numbers<[1], [0], [0], [1], [0, 0, 1, 1], [], []>} : vector<3x32xf32>, vector<32x80xf32>, vector<3x80xf32> -> vector<3x80xf32>
    %190 = arith.addf %183, %189 : vector<3x80xf32>
    %c8_207 = arith.constant 8 : index
    %c0_208 = arith.constant 0 : index
    %c0_209 = arith.constant 0 : index
    %191 = vector.load %arg10[%c8_207, %c0_208, %c0_209] : memref<9x24x80xf32, #tpu.memory_space<vmem>>, vector<1x24x80xf32>
    %192 = vector.shape_cast %191 : vector<1x24x80xf32> to vector<24x80xf32>
    %cst_210 = arith.constant dense<0.000000e+00> : vector<32x80xf32>
    %193 = tpu.matmul %135, %192, %cst_210 {dimension_numbers = #tpu.dot_dimension_numbers<[1], [0], [0], [1], [0, 0, 1, 1], [], []>} : vector<32x24xf32>, vector<24x80xf32>, vector<32x80xf32> -> vector<32x80xf32>
    %c8_211 = arith.constant 8 : index
    %c0_212 = arith.constant 0 : index
    %c0_213 = arith.constant 0 : index
    %194 = vector.load %arg8[%c8_211, %c0_212, %c0_213] : memref<9x3x32xf32, #tpu.memory_space<vmem>>, vector<1x3x32xf32>
    %195 = vector.shape_cast %194 : vector<1x3x32xf32> to vector<3x32xf32>
    %cst_214 = arith.constant dense<0.000000e+00> : vector<3x80xf32>
    %196 = tpu.matmul %195, %193, %cst_214 {dimension_numbers = #tpu.dot_dimension_numbers<[1], [0], [0], [1], [0, 0, 1, 1], [], []>} : vector<3x32xf32>, vector<32x80xf32>, vector<3x80xf32> -> vector<3x80xf32>
    %197 = arith.addf %190, %196 : vector<3x80xf32>
    %c0_215 = arith.constant 0 : index
    %c0_216 = arith.constant 0 : index
    %198 = vector.load %arg9[%c0_215, %c0_216] : memref<3x1xf32, #tpu.memory_space<vmem>>, vector<3x1xf32>
    %199 = vector.broadcast %198 : vector<3x1xf32> to vector<3x80xf32>
    %200 = arith.addf %197, %199 : vector<3x80xf32>
    %cst_217 = arith.constant 0.000000e+00 : f32
    %201 = vector.broadcast %cst_217 : f32 to vector<3x80xf32>
    %202 = arith.maximumf %200, %201 : vector<3x80xf32>
    %c0_218 = arith.constant 0 : index
    %c0_219 = arith.constant 0 : index
    %203 = vector.load %arg11[%c0_218, %c0_219] : memref<80x256xf32, #tpu.memory_space<vmem>>, vector<80x256xf32>
    %cst_220 = arith.constant dense<0.000000e+00> : vector<3x256xf32>
    %204 = tpu.matmul %202, %203, %cst_220 {dimension_numbers = #tpu.dot_dimension_numbers<[1], [0], [0], [1], [0, 0, 1, 1], [], []>} : vector<3x80xf32>, vector<80x256xf32>, vector<3x256xf32> -> vector<3x256xf32>
    %c0_221 = arith.constant 0 : index
    %c0_222 = arith.constant 0 : index
    %c0_223 = arith.constant 0 : index
    %205 = vector.load %arg12[%c0_221, %c0_222, %c0_223] : memref<1x3x256xf32, #tpu.memory_space<vmem>>, vector<1x3x256xf32>
    %206 = vector.shape_cast %205 : vector<1x3x256xf32> to vector<3x256xf32>
    %207 = vector.shape_cast %204 : vector<3x256xf32> to vector<1x3x256xf32>
    tpu.vector_store %arg12[%c0_221, %c0_222, %c0_223], %207 {strides = array<i32>} : memref<1x3x256xf32, #tpu.memory_space<vmem>>, vector<1x3x256xf32>,
    return
  }
  func.func @transform_0(%arg0: i32) -> (i32, i32, i32) {
    %c0_i32 = arith.constant 0 : i32
    %c0_i32_0 = arith.constant 0 : i32
    %c0_i32_1 = arith.constant 0 : i32
    return %arg0, %c0_i32, %c0_i32_0 : i32, i32, i32
  }
  func.func @transform_1(%arg0: i32) -> (i32, i32, i32) {
    %c0_i32 = arith.constant 0 : i32
    %c0_i32_0 = arith.constant 0 : i32
    %c0_i32_1 = arith.constant 0 : i32
    %c0_i32_2 = arith.constant 0 : i32
    return %c0_i32, %c0_i32_0, %c0_i32_1 : i32, i32, i32
  }
  func.func @transform_2(%arg0: i32) -> (i32, i32) {
    %c0_i32 = arith.constant 0 : i32
    %c0_i32_0 = arith.constant 0 : i32
    %c0_i32_1 = arith.constant 0 : i32
    return %c0_i32, %c0_i32_0 : i32, i32
  }
  func.func @transform_3(%arg0: i32) -> (i32, i32, i32) {
    %c0_i32 = arith.constant 0 : i32
    %c0_i32_0 = arith.constant 0 : i32
    %c0_i32_1 = arith.constant 0 : i32
    %c0_i32_2 = arith.constant 0 : i32
    return %c0_i32, %c0_i32_0, %c0_i32_1 : i32, i32, i32
  }
  func.func @transform_4(%arg0: i32) -> (i32, i32, i32) {
    %c0_i32 = arith.constant 0 : i32
    %c0_i32_0 = arith.constant 0 : i32
    %c0_i32_1 = arith.constant 0 : i32
    %c0_i32_2 = arith.constant 0 : i32
    return %c0_i32, %c0_i32_0, %c0_i32_1 : i32, i32, i32
  }
  func.func @transform_5(%arg0: i32) -> (i32, i32) {
    %c0_i32 = arith.constant 0 : i32
    %c0_i32_0 = arith.constant 0 : i32
    %c0_i32_1 = arith.constant 0 : i32
    return %c0_i32, %c0_i32_0 : i32, i32
  }
  func.func @transform_6(%arg0: i32) -> (i32, i32, i32) {
    %c0_i32 = arith.constant 0 : i32
    %c0_i32_0 = arith.constant 0 : i32
    %c0_i32_1 = arith.constant 0 : i32
    %c0_i32_2 = arith.constant 0 : i32
    return %c0_i32, %c0_i32_0, %c0_i32_1 : i32, i32, i32
  }
  func.func @transform_7(%arg0: i32) -> (i32, i32, i32) {
    %c0_i32 = arith.constant 0 : i32
    %c0_i32_0 = arith.constant 0 : i32
    %c0_i32_1 = arith.constant 0 : i32
    %c0_i32_2 = arith.constant 0 : i32
    return %c0_i32, %c0_i32_0, %c0_i32_1 : i32, i32, i32
  }
  func.func @transform_8(%arg0: i32) -> (i32, i32) {
    %c0_i32 = arith.constant 0 : i32
    %c0_i32_0 = arith.constant 0 : i32
    %c0_i32_1 = arith.constant 0 : i32
    return %c0_i32, %c0_i32_0 : i32, i32
  }
  func.func @transform_9(%arg0: i32) -> (i32, i32, i32) {
    %c0_i32 = arith.constant 0 : i32
    %c0_i32_0 = arith.constant 0 : i32
    %c0_i32_1 = arith.constant 0 : i32
    %c0_i32_2 = arith.constant 0 : i32
    return %c0_i32, %c0_i32_0, %c0_i32_1 : i32, i32, i32
  }
  func.func @transform_10(%arg0: i32) -> (i32, i32) {
    %c0_i32 = arith.constant 0 : i32
    %c0_i32_0 = arith.constant 0 : i32
    %c0_i32_1 = arith.constant 0 : i32
    return %c0_i32, %c0_i32_0 : i32, i32
  }
  func.func @transform_11(%arg0: i32) -> (i32, i32, i32) {
    %c0_i32 = arith.constant 0 : i32
    %c0_i32_0 = arith.constant 0 : i32
    %c0_i32_1 = arith.constant 0 : i32
    return %arg0, %c0_i32, %c0_i32_0 : i32, i32, i32
  }
}

</mosaic_0001>

<bundles_post_ra>
// kernel: cnn_decoder_forward.1
= control target key start
LH: loop header
LB: loop body
LE: loop exit
PB: predicated region body
PF: predicated region fallthrough
CT: control target
= control target key end

     0   :  { %s7294_s17 = smov 0   ;;  %s8127_s0 = inlined_call_operand.vmem [shape: f32[2,32,4], index: 0, kind: input, shape index: {}]   ;;  %s8128_s1 = inlined_call_operand.vmem [shape: f32[9,32,32], index: 1, kind: input, shape index: {}]   ;;  %s8129_s2 = inlined_call_operand.vmem [shape: f32[32,1], index: 2, kind: input, shape index: {}]   ;;  %s8130_s3 = inlined_call_operand.vmem [shape: f32[9,4,8], index: 3, kind: input, shape index: {}]   ;;  %s8131_s4 = inlined_call_operand.vmem [shape: f32[9,32,32], index: 4, kind: input, shape index: {}]   ;;  %s8132_s5 = inlined_call_operand.vmem [shape: f32[32,1], index: 5, kind: input, shape index: {}]   ;;  %s8133_s6 = inlined_call_operand.vmem [shape: f32[9,8,24], index: 6, kind: input, shape index: {}]   ;;  %s8134_s7 = inlined_call_operand.vmem [shape: f32[9,3,32], index: 7, kind: input, shape index: {}]   ;;  %s8135_s8 = inlined_call_operand.vmem [shape: f32[3,1], index: 8, kind: input, shape index: {}]   ;;  %s8136_s9 = inlined_call_operand.vmem [shape: f32[9,24,80], index: 9, kind: input, shape index: {}]   ;;  %s8137_s10 = inlined_call_operand.vmem [shape: f32[80,256], index: 10, kind: input, shape index: {}]   ;;  %s8138_s11 = inlined_call_operand.vmem [shape: f32[2,3,256], index: 11, kind: output, shape index: {}]  }
   0x1 LB: > { %s5621_s18 = sadd.s32 4294967295, %s7228_s17   ;;  %p5625_p0 = scmp.ge.s32.totalorder %s7228_s17, 1  ;;  %s7228_s17 = sphi %s7294_s17, %s21_s17  }
   0x2   : > { %p337_p1 = scmp.lt.s32.totalorder %s7228_s17, 3 }
   0x4   : > { %p338_p2 = pnand %p5625_p0, %p337_p1 }
   0x5   : > { %vm405_vm0 = vcmask (!%p338_p2), 1043456   ;;  %v5635_v0 = vld [vmem:[%s8130_s3 + $0x4] sm:$0xf] (!%p338_p2)  ;;  %p377_p3 = scmp.lt.s32.totalorder (!%p338_p2), %s5621_s18, 1  ;;  %vm392_vm1 = vcmask (!%p338_p2), 31744   ;;  %vm593_vm2 = vcmask (!%p338_p2), 261120  }
   0x6   : > { %341 = sbr.rel (%p338_p2) target bundleno = 2193 (0x891), region = 64  ;;  %6295 = vmatprep.subr.msk.mxu1 (!%p338_p2), %vm405_vm0, %v5635_v0  ;;  %v391_v5 = vld [vmem:[%s8130_s3] sm:$0xf] (!%p338_p2)  ;;  %v5653_v13 = vld [vmem:[%s8130_s3 + $0x8] sm:$0xf] (!%p338_p2)  ;;  %v5643_v15 = vld [vmem:[%s8128_s1 + $0x30] sm:$0xff] (!%p338_p2) }
   0x7   : > { %6296 = vmatpush3.msk.msra.mxu1 (!%p338_p2), %vm405_vm0, %v5635_v0  ;;  %6287 = vmatprep.subr.msk.mxu0 (!%p338_p2), %vm405_vm0, %v391_v5  ;;  %v5641_v6 = vld [vmem:[%s8128_s1 + $0x20] sm:$0xff] (!%p338_p2)  ;;  %v5642_v14 = vld [vmem:[%s8128_s1 + $0x28] sm:$0xff] (!%p338_p2)  ;;  %v5644_v17 = vld [vmem:[%s8128_s1 + $0x38] sm:$0xff] (!%p338_p2)  ;;  %v7230_v36 = vmov (!%p338_p2), 0   ;;  %vm2193_vm3 = vcmask (!%p338_p2), 64512   ;;  %vm3967_vm4 = vcmask (!%p338_p2), 195584  }
   0x8   : > { %6288 = vmatpush3.msk.msra.mxu0 (!%p338_p2), %vm405_vm0, %v391_v5  ;;  %v5667_v16 = vld [vmem:[%s8130_s3 + $0xc] sm:$0xf] (!%p338_p2)  ;;  %v5681_v18 = vld [vmem:[%s8130_s3 + $0x10] sm:$0xf] (!%p338_p2)  ;;  %v5695_v19 = vld [vmem:[%s8130_s3 + $0x14] sm:$0xf] (!%p338_p2)  ;;  %7220 = vset.pattern.permute.xlu0 (!%p338_p2), %v7230_v36 }
   0x9   : > { %v5709_v20 = vld [vmem:[%s8130_s3 + $0x18] sm:$0xf] (!%p338_p2)  ;;  %v5723_v21 = vld [vmem:[%s8130_s3 + $0x1c] sm:$0xf] (!%p338_p2)  ;;  %v5737_v22 = vld [vmem:[%s8130_s3 + $0x20] sm:$0xf] (!%p338_p2)  ;;  %7221 = vset.pattern.permute.xlu1 (!%p338_p2), %v7230_v36 }
   0xa   : > { %v494_v29 = vld [vmem:[%s8128_s1] sm:$0xff] (!%p338_p2)  ;;  %v495_v30 = vld [vmem:[%s8128_s1 + $0x8] sm:$0xff] (!%p338_p2)  ;;  %v496_v31 = vld [vmem:[%s8128_s1 + $0x10] sm:$0xff] (!%p338_p2)  ;;  %vm7232_vm5 = vmmov (!%p338_p2), 0   ;;  %vm5486_vm6 = vcmask (!%p338_p2), 654336  }
   0xb   : > { %v497_v32 = vld [vmem:[%s8128_s1 + $0x18] sm:$0xff] (!%p338_p2)  ;;  %v5659_v33 = vld [vmem:[%s8128_s1 + $0x40] sm:$0xff] (!%p338_p2)  ;;  %v2162_v35 = vld [vmem:[%s8129_s2 + $0x10] sm:$0xff] (!%p338_p2) }
   0xc   : > { %v2160_v34 = vld [vmem:[%s8129_s2] sm:$0xff] (!%p338_p2)  ;;  %2176 = vperm.xlu1 (!%p338_p2), %7221, %v2162_v35   ;;  %v2161_v37 = vld [vmem:[%s8129_s2 + $0x8] sm:$0xff] (!%p338_p2)  ;;  %v2163_v38 = vld [vmem:[%s8129_s2 + $0x18] sm:$0xff] (!%p338_p2) }
   0xd   : > { %s8140_s18 = smov (!%p377_p3, %s5621_s18), 1  ;;  %2166 = vperm.xlu0 %7220, %v2160_v34   ;;  %v3932_v39 = vld [vmem:[%s8132_s5] sm:$0xff]  ;;  %v3933_v40 = vld [vmem:[%s8132_s5 + $0x8] sm:$0xff]  ;;  %v3934_v41 = vld [vmem:[%s8132_s5 + $0x10] sm:$0xff] }
   0xe   : > { %s5943_s21 = sshll.u32 %s8140_s18, 5  ;;  %v3935_v42 = vld [vmem:[%s8132_s5 + $0x18] sm:$0xff]  ;;  %v5458_v43 = vld [vmem:[%s8135_s8] sm:$0x7]  ;;  %v5660_v56 = vld [vmem:[%s8128_s1 + $0x48] sm:$0xff]  ;;  %s5944_s27 = sshll.u32 %s8140_s18, 3 }
   0xf   : > { %s381_s24 = scalar_lea.vmem %s8127_s0, %s5943_s21  ;;  %v5661_v58 = vld [vmem:[%s8128_s1 + $0x50] sm:$0xff]  ;;  %v5662_v61 = vld [vmem:[%s8128_s1 + $0x58] sm:$0xff]  ;;  %v5673_v63 = vld [vmem:[%s8128_s1 + $0x60] sm:$0xff]  ;;  %s386_s30 = scalar_lea.vmem %s8138_s11, %s5944_s27 }
  0x10   : > { %v7313_v1 = vld [vmem:[%s381_s24] sm:$0xff]  ;;  %v7315_v2 = vld [vmem:[%s381_s24 + $0x8] sm:$0xff]  ;;  %v7317_v3 = vld [vmem:[%s381_s24 + $0x10] sm:$0xff]  ;;  %2181 = vperm.xlu1 %7221, %v2163_v38  }
  0x11   : > { %6297 = vmatprep.mubr.msk.f32.mxu1 %vm392_vm1, %v7313_v1  ;;  %6289 = vmatprep.mubr.msk.f32.mxu0 %vm392_vm1, %v7313_v1  ;;  %v7327_v4 = vld [vmem:[%s381_s24 + $0x18] sm:$0xff]  ;;  %v5717_v34 = vld [vmem:[%s8128_s1 + $0xd0] sm:$0xff] }
  0x12   : > { %6298 = vmatmul.mubr.msk.f32.vlgmr.msra.gmra.mrb[0].mxu1 %vm392_vm1, %v7315_v2  ;;  %6290 = vmatmul.mubr.msk.f32.vlgmr.msra.gmra.mrb[0].mxu0 %vm392_vm1, %v7315_v2 }
  0x13   : > { %6300 = vmatprep.mubr.msk.f32.mxu1 %vm392_vm1, %v7317_v3  ;;  %6292 = vmatprep.mubr.msk.f32.mxu0 %vm392_vm1, %v7317_v3 }
  0x14   : > { %2171 = vperm.xlu0 %7220, %v2161_v37   ;;  %3943 = vperm.xlu1 %7221, %v3933_v40   ;;  %v5718_v37 = vld [vmem:[%s8128_s1 + $0xd8] sm:$0xff] }
  0x16   : > { %6301 = vmatmul.mubr.msk.f32.gmra.mrb[2].mxu1 %vm392_vm1, %v7327_v4  ;;  %6293 = vmatmul.mubr.msk.f32.gmra.mrb[2].mxu0 %vm392_vm1, %v7327_v4 }
  0x17   : > { %6311 = vmatprep.mubr.msk.f32.mxu1 %vm593_vm2, %v5641_v6  ;;  %6325 = vmatprep.mubr.msk.f32.mxu0 %vm593_vm2, %v494_v29  ;;  %v5715_v29 = vld [vmem:[%s8128_s1 + $0xc0] sm:$0xff] }
  0x18   : > { %3938 = vperm.xlu0 %7220, %v3932_v39   ;;  %3953 = vperm.xlu1 %7221, %v3935_v42   ;;  %v5729_v39 = vld [vmem:[%s8128_s1 + $0xe0] sm:$0xff]  ;;  %v5730_v42 = vld [vmem:[%s8128_s1 + $0xe8] sm:$0xff] }
  0x1c   : > { %3948 = vperm.xlu0 %7220, %v3934_v41  }
  0x20   : > { %5461 = vperm.xlu0 %7220, %v5458_v43  }
  0xe5   : > { %v6299_v7 = vpop.f32.mrb[0].mxu1  ;;  %v6291_v23 = vpop.f32.mrb[0].mxu0 }
  0xe6   : > { %v569_v8 = vpop.f32.mrb[1].mxu1  ;;  %v475_v24 = vpop.f32.mrb[1].mxu0 }
  0xe7   : > { %v6890_v9 = vpack.c.bf16 %v6299_v7, %v569_v8  ;;  %v6898_v25 = vpack.c.bf16 %v6291_v23, %v475_v24  ;;  %v5676_v7 = vld [vmem:[%s8128_s1 + $0x78] sm:$0xff]  ;;  %v5703_v24 = vld [vmem:[%s8128_s1 + $0xb0] sm:$0xff] }
  0xe9   : > { %v6302_v10 = vpop.f32.mrb[2].mxu1  ;;  %6891 = vmatprep.subr.bf16.mxu1 %v6890_v9  ;;  %v6294_v26 = vpop.f32.mrb[2].mxu0  ;;  %6899 = vmatprep.subr.bf16.mxu0 %v6898_v25 }
  0xea   : > { %v579_v11 = vpop.f32.mrb[3].mxu1  ;;  %6893 = vmatpush3.bf16.msra.mxu1 %v6890_v9  ;;  %v485_v27 = vpop.f32.mrb[3].mxu0  ;;  %6901 = vmatpush3.bf16.msra.mxu0 %v6898_v25  ;;  %v5687_v9 = vld [vmem:[%s8128_s1 + $0x80] sm:$0xff] }
  0xeb   : > { %v6894_v12 = vpack.c.bf16 %v6302_v10, %v579_v11  ;;  %v6902_v28 = vpack.c.bf16 %v6294_v26, %v485_v27  ;;  %v5704_v27 = vld [vmem:[%s8128_s1 + $0xb8] sm:$0xff] }
  0xed   : > { %6895 = vmatprep.subr.bf16.mxu1 %v6894_v12  ;;  %6903 = vmatprep.subr.bf16.mxu0 %v6902_v28 }
  0xee   : > { %6897 = vmatpush3.bf16.msra.mxu1 %v6894_v12  ;;  %6905 = vmatpush3.bf16.msra.mxu0 %v6902_v28  ;;  %v5688_v12 = vld [vmem:[%s8128_s1 + $0x88] sm:$0xff] }
  0xef   : > { %6331 = vmatprep.subr.msk.mxu1 %vm405_vm0, %v5653_v13 }
  0xf1   : > { %6312 = vmatmul.mubr.msk.f32.vlgmr.msra.gmra.mrb[4].mxu1 %vm593_vm2, %v5642_v14  ;;  %6326 = vmatmul.mubr.msk.f32.vlgmr.msra.gmra.mrb[4].mxu0 %vm593_vm2, %v495_v30  ;;  %v5689_v14 = vld [vmem:[%s8128_s1 + $0x90] sm:$0xff] }
  0xf2   : > { %6332 = vmatpush3.msk.msra.mxu1 %vm405_vm0, %v5653_v13  ;;  %6314 = vmatprep.mubr.msk.f32.mxu1 %vm593_vm2, %v5643_v15 }
  0xf3   : > { %6353 = vmatprep.subr.msk.mxu1 %vm405_vm0, %v5667_v16  ;;  %6328 = vmatprep.mubr.msk.f32.mxu0 %vm593_vm2, %v496_v31 }
  0xf5   : > { %6315 = vmatmul.mubr.msk.f32.gmra.mrb[6].mxu1 %vm593_vm2, %v5644_v17  ;;  %6329 = vmatmul.mubr.msk.f32.gmra.mrb[6].mxu0 %vm593_vm2, %v497_v32  ;;  %v5690_v17 = vld [vmem:[%s8128_s1 + $0x98] sm:$0xff]  ;;  %v5716_v32 = vld [vmem:[%s8128_s1 + $0xc8] sm:$0xff] }
  0xf6   : > { %6333 = vmatprep.mubr.msk.f32.mxu1 %vm392_vm1, %v7313_v1  ;;  %6347 = vmatprep.mubr.msk.f32.mxu0 %vm593_vm2, %v5659_v33 }
  0xf9   : > { %6334 = vmatmul.mubr.msk.f32.vlgmr.msra.gmra.mrb[8].mxu1 %vm392_vm1, %v7315_v2 }
  0xfa   : > { %6354 = vmatpush3.msk.msra.mxu1 %vm405_vm0, %v5667_v16  ;;  %6336 = vmatprep.mubr.msk.f32.mxu1 %vm392_vm1, %v7317_v3 }
  0xfb   : > { %6375 = vmatprep.subr.msk.mxu1 %vm405_vm0, %v5681_v18 }
  0xfd   : > { %6337 = vmatmul.mubr.msk.f32.gmra.mrb[10].mxu1 %vm392_vm1, %v7327_v4 }
  0xfe   : > { %6355 = vmatprep.mubr.msk.f32.mxu1 %vm392_vm1, %v7313_v1 }
 0x101   : > { %6356 = vmatmul.mubr.msk.f32.vlgmr.msra.gmra.mrb[12].mxu1 %vm392_vm1, %v7315_v2 }
 0x102   : > { %6376 = vmatpush3.msk.msra.mxu1 %vm405_vm0, %v5681_v18  ;;  %6358 = vmatprep.mubr.msk.f32.mxu1 %vm392_vm1, %v7317_v3 }
 0x103   : > { %6397 = vmatprep.subr.msk.mxu1 %vm405_vm0, %v5695_v19 }
 0x105   : > { %6359 = vmatmul.mubr.msk.f32.gmra.mrb[14].mxu1 %vm392_vm1, %v7327_v4 }
 0x106   : > { %6377 = vmatprep.mubr.msk.f32.mxu1 %vm392_vm1, %v7313_v1 }
 0x109   : > { %6378 = vmatmul.mubr.msk.f32.vlgmr.msra.gmra.mrb[16].mxu1 %vm392_vm1, %v7315_v2 }
 0x10a   : > { %6398 = vmatpush3.msk.msra.mxu1 %vm405_vm0, %v5695_v19  ;;  %6380 = vmatprep.mubr.msk.f32.mxu1 %vm392_vm1, %v7317_v3  ;;  %v5701_v19 = vld [vmem:[%s8128_s1 + $0xa0] sm:$0xff] }
 0x10b   : > { %6419 = vmatprep.subr.msk.mxu1 %vm405_vm0, %v5709_v20 }
 0x10d   : > { %6381 = vmatmul.mubr.msk.f32.gmra.mrb[18].mxu1 %vm392_vm1, %v7327_v4 }
 0x10e   : > { %6399 = vmatprep.mubr.msk.f32.mxu1 %vm392_vm1, %v7313_v1 }
 0x111   : > { %6400 = vmatmul.mubr.msk.f32.vlgmr.msra.gmra.mrb[20].mxu1 %vm392_vm1, %v7315_v2 }
 0x112   : > { %6420 = vmatpush3.msk.msra.mxu1 %vm405_vm0, %v5709_v20  ;;  %6402 = vmatprep.mubr.msk.f32.mxu1 %vm392_vm1, %v7317_v3 }
 0x113   : > { %6441 = vmatprep.subr.msk.mxu1 %vm405_vm0, %v5723_v21 }
 0x115   : > { %6403 = vmatmul.mubr.msk.f32.gmra.mrb[22].mxu1 %vm392_vm1, %v7327_v4 }
 0x116   : > { %6421 = vmatprep.mubr.msk.f32.mxu1 %vm392_vm1, %v7313_v1 }
 0x119   : > { %6422 = vmatmul.mubr.msk.f32.vlgmr.msra.gmra.mrb[24].mxu1 %vm392_vm1, %v7315_v2 }
 0x11a   : > { %6442 = vmatpush3.msk.msra.mxu1 %vm405_vm0, %v5723_v21  ;;  %6424 = vmatprep.mubr.msk.f32.mxu1 %vm392_vm1, %v7317_v3 }
 0x11b   : > { %6463 = vmatprep.subr.msk.mxu1 %vm405_vm0, %v5737_v22 }
 0x11d   : > { %6425 = vmatmul.mubr.msk.f32.gmra.mrb[26].mxu1 %vm392_vm1, %v7327_v4 }
 0x11e   : > { %6443 = vmatprep.mubr.msk.f32.mxu1 %vm392_vm1, %v7313_v1 }
 0x121   : > { %6444 = vmatmul.mubr.msk.f32.vlgmr.msra.gmra.mrb[28].mxu1 %vm392_vm1, %v7315_v2 }
 0x122   : > { %6464 = vmatpush3.msk.msra.mxu1 %vm405_vm0, %v5737_v22  ;;  %6446 = vmatprep.mubr.msk.f32.mxu1 %vm392_vm1, %v7317_v3  ;;  %v5702_v22 = vld [vmem:[%s8128_s1 + $0xa8] sm:$0xff] }
 0x125   : > { %6447 = vmatmul.mubr.msk.f32.gmra.mrb[30].mxu1 %vm392_vm1, %v7327_v4 }
 0x126   : > { %6465 = vmatprep.mubr.msk.f32.mxu1 %vm392_vm1, %v7313_v1 }
 0x129   : > { %6466 = vmatmul.mubr.msk.f32.vlgmr.msra.gmra.mrb[32].mxu1 %vm392_vm1, %v7315_v2  ;;  %v5674_v2 = vld [vmem:[%s8128_s1 + $0x68] sm:$0xff] }
 0x12a   : > { %6468 = vmatprep.mubr.msk.f32.mxu1 %vm392_vm1, %v7317_v3 }
 0x12d   : > { %6469 = vmatmul.mubr.msk.f32.gmra.mrb[34].mxu1 %vm392_vm1, %v7327_v4  ;;  %v5675_v4 = vld [vmem:[%s8128_s1 + $0x70] sm:$0xff] }
 0x1c4   : > { %v7496_v44 = vpop.f32.mrb[4].mxu1 }
 0x1c5   : > { %v7498_v45 = vpop.f32.mrb[5].mxu1 }
 0x1c8   : > { %v7500_v46 = vpop.f32.mrb[6].mxu1 }
 0x1c9   : > { %v7502_v47 = vpop.f32.mrb[7].mxu1 }
 0x1cc   : > { %v6335_v48 = vpop.f32.mrb[8].mxu1 }
 0x1cd   : > { %v859_v49 = vpop.f32.mrb[9].mxu1 }
 0x1ce   : > { %v6906_v50 = vpack.c.bf16 %v6335_v48, %v859_v49  ;;  %v5731_v48 = vld [vmem:[%s8128_s1 + $0xf0] sm:$0xff] }
 0x1d0   : > { %v6338_v51 = vpop.f32.mrb[10].mxu1  ;;  %6907 = vmatprep.subr.bf16.mxu0 %v6906_v50 }
 0x1d1   : > { %v869_v52 = vpop.f32.mrb[11].mxu1  ;;  %6909 = vmatpush3.bf16.msra.mxu0 %v6906_v50 }
 0x1d2   : > { %v6910_v53 = vpack.c.bf16 %v6338_v51, %v869_v52  ;;  %v5732_v51 = vld [vmem:[%s8128_s1 + $0xf8] sm:$0xff] }
 0x1d4   : > { %6911 = vmatprep.subr.bf16.mxu0 %v6910_v53  ;;  %v6357_v54 = vpop.f32.mrb[12].mxu1 }
 0x1d5   : > { %6913 = vmatpush3.bf16.msra.mxu0 %v6910_v53  ;;  %v1055_v55 = vpop.f32.mrb[13].mxu1  ;;  %v5743_v53 = vld [vmem:[%s8128_s1 + $0x100] sm:$0xff] }
 0x1d6   : > { %v6914_v57 = vpack.c.bf16 %v6357_v54, %v1055_v55  ;;  %v5744_v54 = vld [vmem:[%s8128_s1 + $0x108] sm:$0xff]  ;;  %v5745_v55 = vld [vmem:[%s8128_s1 + $0x110] sm:$0xff] }
 0x1d8   : > { %6348 = vmatmul.mubr.msk.f32.vlgmr.msra.gmra.mrb[4].mxu0 %vm593_vm2, %v5660_v56  ;;  %v6360_v59 = vpop.f32.mrb[14].mxu1  ;;  %6915 = vmatprep.subr.bf16.mxu0 %v6914_v57  ;;  %v5746_v56 = vld [vmem:[%s8128_s1 + $0x118] sm:$0xff] }
 0x1d9   : > { %v1065_v60 = vpop.f32.mrb[15].mxu1  ;;  %6917 = vmatpush3.bf16.msra.mxu0 %v6914_v57  ;;  %6350 = vmatprep.mubr.msk.f32.mxu0 %vm593_vm2, %v5661_v58  ;;  %v2192_v57 = vld [vmem:[%s8133_s6] sm:$0xff]  ;;  %v5755_v58 = vld [vmem:[%s8133_s6 + $0x8] sm:$0xff] }
 0x1da   : > { %v6918_v62 = vpack.c.bf16 %v6360_v59, %v1065_v60  ;;  %6485 = vmatprep.subr.mxu1 %v2192_v57  ;;  %v2167_v59 = vpop.permute.xlu0 %2166  ;;  %v2177_v60 = vpop.permute.xlu1 %2176 }
 0x1db   : > { %6486 = vmatpush3.msra.mxu1 %v2192_v57  ;;  %v5777_v57 = vld [vmem:[%s8131_s4 + $0x40] sm:$0xff] }
 0x1dc   : > { %6351 = vmatmul.mubr.msk.f32.gmra.mrb[6].mxu0 %vm593_vm2, %v5662_v61  ;;  %6919 = vmatprep.subr.bf16.mxu0 %v6918_v62  ;;  %v6379_v0 = vpop.f32.mrb[16].mxu1 }
 0x1dd   : > { %6921 = vmatpush3.bf16.msra.mxu0 %v6918_v62  ;;  %v1251_v1 = vpop.f32.mrb[17].mxu1  ;;  %6369 = vmatprep.mubr.msk.f32.mxu0 %vm593_vm2, %v5673_v63 }
 0x1de   : > { %v6922_v3 = vpack.c.bf16 %v6379_v0, %v1251_v1  ;;  %6493 = vmatprep.subr.mxu1 %v5755_v58  ;;  %v2172_v0 = vpop.permute.xlu0 %2171 }
 0x1e0   : > { %6370 = vmatmul.mubr.msk.f32.vlgmr.msra.gmra.mrb[4].mxu0 %vm593_vm2, %v5674_v2  ;;  %v6382_v5 = vpop.f32.mrb[18].mxu1  ;;  %6923 = vmatprep.subr.bf16.mxu0 %v6922_v3 }
 0x1e1   : > { %v1261_v6 = vpop.f32.mrb[19].mxu1  ;;  %6925 = vmatpush3.bf16.msra.mxu0 %v6922_v3  ;;  %6372 = vmatprep.mubr.msk.f32.mxu0 %vm593_vm2, %v5675_v4 }
 0x1e2   : > { %v6926_v8 = vpack.c.bf16 %v6382_v5, %v1261_v6 }
 0x1e4   : > { %6373 = vmatmul.mubr.msk.f32.gmra.mrb[6].mxu0 %vm593_vm2, %v5676_v7  ;;  %6927 = vmatprep.subr.bf16.mxu0 %v6926_v8  ;;  %v6401_v10 = vpop.f32.mrb[20].mxu1  ;;  %v2182_v7 = vpop.permute.xlu1 %2181 }
 0x1e5   : > { %6929 = vmatpush3.bf16.msra.mxu0 %v6926_v8  ;;  %v1447_v11 = vpop.f32.mrb[21].mxu1  ;;  %6391 = vmatprep.mubr.msk.f32.mxu0 %vm593_vm2, %v5687_v9 }
 0x1e6   : > { %v6930_v13 = vpack.c.bf16 %v6401_v10, %v1447_v11 }
 0x1e8   : > { %6392 = vmatmul.mubr.msk.f32.vlgmr.msra.gmra.mrb[4].mxu0 %vm593_vm2, %v5688_v12  ;;  %v6404_v15 = vpop.f32.mrb[22].mxu1  ;;  %6931 = vmatprep.subr.bf16.mxu0 %v6930_v13 }
 0x1e9   : > { %v1457_v16 = vpop.f32.mrb[23].mxu1  ;;  %6933 = vmatpush3.bf16.msra.mxu0 %v6930_v13  ;;  %6394 = vmatprep.mubr.msk.f32.mxu0 %vm593_vm2, %v5689_v14  ;;  %v5798_v13 = vld [vmem:[%s8133_s6 + $0x20] sm:$0xff]  ;;  %v5811_v14 = vld [vmem:[%s8133_s6 + $0x28] sm:$0xff] }
 0x1ea   : > { %v6934_v18 = vpack.c.bf16 %v6404_v15, %v1457_v16  ;;  %v5824_v15 = vld [vmem:[%s8133_s6 + $0x30] sm:$0xff]  ;;  %v5837_v16 = vld [vmem:[%s8133_s6 + $0x38] sm:$0xff] }
 0x1ec   : > { %6395 = vmatmul.mubr.msk.f32.gmra.mrb[6].mxu0 %vm593_vm2, %v5690_v17  ;;  %6935 = vmatprep.subr.bf16.mxu0 %v6934_v18  ;;  %v6423_v20 = vpop.f32.mrb[24].mxu1  ;;  %v5850_v17 = vld [vmem:[%s8133_s6 + $0x40] sm:$0xff] }
 0x1ed   : > { %6937 = vmatpush3.bf16.msra.mxu0 %v6934_v18  ;;  %v1643_v21 = vpop.f32.mrb[25].mxu1  ;;  %6413 = vmatprep.mubr.msk.f32.mxu0 %vm593_vm2, %v5701_v19  ;;  %v5760_v18 = vld [vmem:[%s8131_s4 + $0x20] sm:$0xff] }
 0x1ee   : > { %v6938_v23 = vpack.c.bf16 %v6423_v20, %v1643_v21  ;;  %v3964_v19 = vld [vmem:[%s8136_s9] sm:$0xff]  ;;  %v3965_v20 = vld [vmem:[%s8136_s9 + $0x8] sm:$0xff] }
 0x1ef   : > { %v7034_v21 = vpack.c.bf16 %v3965_v20, %v3964_v19  ;;  %v5816_v19 = vld [vmem:[%s8131_s4 + $0xa0] sm:$0xff] }
 0x1f0   : > { %6414 = vmatmul.mubr.msk.f32.vlgmr.msra.gmra.mrb[4].mxu0 %vm593_vm2, %v5702_v22  ;;  %v6426_v25 = vpop.f32.mrb[26].mxu1  ;;  %6939 = vmatprep.subr.bf16.mxu0 %v6938_v23 }
 0x1f1   : > { %v1653_v26 = vpop.f32.mrb[27].mxu1  ;;  %6941 = vmatpush3.bf16.msra.mxu0 %v6938_v23  ;;  %6416 = vmatprep.mubr.msk.f32.mxu0 %vm593_vm2, %v5703_v24 }
 0x1f2   : > { %v6942_v28 = vpack.c.bf16 %v6426_v25, %v1653_v26 }
 0x1f4   : > { %6417 = vmatmul.mubr.msk.f32.gmra.mrb[6].mxu0 %vm593_vm2, %v5704_v27  ;;  %6943 = vmatprep.subr.bf16.mxu0 %v6942_v28  ;;  %v6445_v30 = vpop.f32.mrb[28].mxu1 }
 0x1f5   : > { %6945 = vmatpush3.bf16.msra.mxu0 %v6942_v28  ;;  %v1839_v31 = vpop.f32.mrb[29].mxu1  ;;  %6435 = vmatprep.mubr.msk.f32.mxu0 %vm593_vm2, %v5715_v29 }
 0x1f6   : > { %v6946_v33 = vpack.c.bf16 %v6445_v30, %v1839_v31 }
 0x1f8   : > { %6436 = vmatmul.mubr.msk.f32.vlgmr.msra.gmra.mrb[4].mxu0 %vm593_vm2, %v5716_v32  ;;  %v6448_v35 = vpop.f32.mrb[30].mxu1  ;;  %6947 = vmatprep.subr.bf16.mxu0 %v6946_v33 }
 0x1f9   : > { %v1849_v36 = vpop.f32.mrb[31].mxu1  ;;  %6949 = vmatpush3.bf16.msra.mxu0 %v6946_v33  ;;  %6438 = vmatprep.mubr.msk.f32.mxu0 %vm593_vm2, %v5717_v34 }
 0x1fa   : > { %v6950_v38 = vpack.c.bf16 %v6448_v35, %v1849_v36  ;;  %v5761_v36 = vld [vmem:[%s8131_s4 + $0x28] sm:$0xff] }
 0x1fc   : > { %6439 = vmatmul.mubr.msk.f32.gmra.mrb[6].mxu0 %vm593_vm2, %v5718_v37  ;;  %6951 = vmatprep.subr.bf16.mxu0 %v6950_v38  ;;  %v6467_v40 = vpop.f32.mrb[32].mxu1 }
 0x1fd   : > { %6953 = vmatpush3.bf16.msra.mxu0 %v6950_v38  ;;  %v2035_v41 = vpop.f32.mrb[33].mxu1  ;;  %6457 = vmatprep.mubr.msk.f32.mxu0 %vm593_vm2, %v5729_v39  ;;  %v5762_v38 = vld [vmem:[%s8131_s4 + $0x30] sm:$0xff] }
 0x1fe   : > { %v6954_v43 = vpack.c.bf16 %v6467_v40, %v2035_v41  ;;  %v5763_v41 = vld [vmem:[%s8131_s4 + $0x38] sm:$0xff] }
 0x200   : > { %6458 = vmatmul.mubr.msk.f32.vlgmr.msra.gmra.mrb[4].mxu0 %vm593_vm2, %v5730_v42  ;;  %v6470_v49 = vpop.f32.mrb[34].mxu1  ;;  %6955 = vmatprep.subr.bf16.mxu0 %v6954_v43 }
 0x201   : > { %v2045_v50 = vpop.f32.mrb[35].mxu1  ;;  %6957 = vmatpush3.bf16.msra.mxu0 %v6954_v43  ;;  %6460 = vmatprep.mubr.msk.f32.mxu0 %vm593_vm2, %v5731_v48  ;;  %v2291_v43 = vld [vmem:[%s8131_s4] sm:$0xff] }
 0x202   : > { %v6958_v52 = vpack.c.bf16 %v6470_v49, %v2045_v50  ;;  %v2292_v50 = vld [vmem:[%s8131_s4 + $0x8] sm:$0xff] }
 0x204   : > { %6461 = vmatmul.mubr.msk.f32.gmra.mrb[6].mxu0 %vm593_vm2, %v5732_v51  ;;  %6959 = vmatprep.subr.bf16.mxu0 %v6958_v52 }
 0x205   : > { %6961 = vmatpush3.bf16.msra.mxu0 %v6958_v52  ;;  %6479 = vmatprep.mubr.msk.f32.mxu0 %vm593_vm2, %v5743_v53  ;;  %v2293_v52 = vld [vmem:[%s8131_s4 + $0x10] sm:$0xff] }
 0x208   : > { %6480 = vmatmul.mubr.msk.f32.vlgmr.msra.gmra.mrb[4].mxu0 %vm593_vm2, %v5744_v54 }
 0x209   : > { %6482 = vmatprep.mubr.msk.f32.mxu0 %vm593_vm2, %v5745_v55  ;;  %v2294_v55 = vld [vmem:[%s8131_s4 + $0x18] sm:$0xff] }
 0x20c   : > { %6483 = vmatmul.mubr.msk.f32.gmra.mrb[6].mxu0 %vm593_vm2, %v5746_v56 }
 0x20d   : > { %6509 = vmatprep.mubr.msk.f32.mxu0 %vm593_vm2, %v5760_v18 }
 0x2db   : > { %v6481_v61 = vpop.f32.mrb[4].mxu0 }
 0x2dc   : > { %v7144_v62 = vadd.f32 %v6481_v61, %v7496_v44  ;;  %v2137_v63 = vpop.f32.mrb[5].mxu0  ;;  %v5772_v44 = vld [vmem:[%s8133_s6 + $0x10] sm:$0xff] }
 0x2dd   : > { %v7145_v1 = vadd.f32 %v2137_v63, %v7498_v45 }
 0x2de   : > { %v2185_v2 = vadd.f32 %v7144_v62, %v2172_v0  ;;  %v5779_v62 = vld [vmem:[%s8131_s4 + $0x50] sm:$0xff] }
 0x2df   : > { %v2184_v3 = vadd.f32 %v7145_v1, %v2167_v59  ;;  %v6484_v4 = vpop.f32.mrb[6].mxu0  ;;  %v5780_v1 = vld [vmem:[%s8131_s4 + $0x58] sm:$0xff] }
 0x2e0   : > { %v7146_v5 = vadd.f32 %v6484_v4, %v7500_v46  ;;  %v2147_v6 = vpop.f32.mrb[7].mxu0  ;;  %v2189_v10 = vmax.f32 %v2185_v2, 0.0 }
 0x2e1   : > { %v2188_v8 = vmax.f32 %v2184_v3, 0.0  ;;  %v7147_v9 = vadd.f32 %v2147_v6, %v7502_v47  ;;  %v5785_v47 = vld [vmem:[%s8133_s6 + $0x18] sm:$0xff]  ;;  %v5790_v3 = vld [vmem:[%s8131_s4 + $0x60] sm:$0xff]  ;;  %v5791_v6 = vld [vmem:[%s8131_s4 + $0x68] sm:$0xff] }
 0x2e2   : > { %v2187_v11 = vadd.f32 %v7146_v5, %v2182_v7 }
 0x2e3   : > { %v2186_v12 = vadd.f32 %v7147_v9, %v2177_v60  ;;  %6487 = vmatprep.mubr.msk.f32.mxu1 %vm2193_vm3, %v2188_v8  ;;  %v5778_v60 = vld [vmem:[%s8131_s4 + $0x48] sm:$0xff] }
 0x2e4   : > { %6488 = vmatmul.mubr.msk.f32.vlgmr.msra.gmra.mrb[36].mxu1 %vm2193_vm3, %v2189_v10  ;;  %v2191_v46 = vmax.f32 %v2187_v11, 0.0  ;;  %v5793_v11 = vld [vmem:[%s8131_s4 + $0x78] sm:$0xff] }
 0x2e5   : > { %v2190_v45 = vmax.f32 %v2186_v12, 0.0  ;;  %6494 = vmatpush3.msra.mxu1 %v5755_v58 }
 0x2e6   : > { %6529 = vmatprep.subr.mxu1 %v5772_v44 }
 0x2e7   : > { %6490 = vmatprep.mubr.msk.f32.mxu1 %vm2193_vm3, %v2190_v45 }
 0x2e8   : > { %6491 = vmatmul.mubr.msk.f32.gmra.mrb[38].mxu1 %vm2193_vm3, %v2191_v46 }
 0x2e9   : > { %6495 = vmatprep.mubr.msk.f32.mxu1 %vm2193_vm3, %v2188_v8 }
 0x2ec   : > { %6496 = vmatmul.mubr.msk.f32.vlgmr.msra.gmra.mrb[40].mxu1 %vm2193_vm3, %v2189_v10 }
 0x2ed   : > { %6498 = vmatprep.mubr.msk.f32.mxu1 %vm2193_vm3, %v2190_v45  ;;  %6530 = vmatpush3.msra.mxu1 %v5772_v44  ;;  %v5803_v44 = vld [vmem:[%s8131_s4 + $0x80] sm:$0xff] }
 0x2ee   : > { %6551 = vmatprep.subr.mxu1 %v5785_v47 }
 0x2f0   : > { %6499 = vmatmul.mubr.msk.f32.gmra.mrb[42].mxu1 %vm2193_vm3, %v2191_v46 }
 0x2f1   : > { %6531 = vmatprep.mubr.msk.f32.mxu1 %vm2193_vm3, %v2188_v8 }
 0x2f4   : > { %6532 = vmatmul.mubr.msk.f32.vlgmr.msra.gmra.mrb[44].mxu1 %vm2193_vm3, %v2189_v10 }
 0x2f5   : > { %6534 = vmatprep.mubr.msk.f32.mxu1 %vm2193_vm3, %v2190_v45  ;;  %6552 = vmatpush3.msra.mxu1 %v5785_v47  ;;  %v5804_v47 = vld [vmem:[%s8131_s4 + $0x88] sm:$0xff] }
 0x2f6   : > { %6573 = vmatprep.subr.mxu1 %v5798_v13 }
 0x2f8   : > { %6535 = vmatmul.mubr.msk.f32.gmra.mrb[46].mxu1 %vm2193_vm3, %v2191_v46 }
 0x2f9   : > { %6553 = vmatprep.mubr.msk.f32.mxu1 %vm2193_vm3, %v2188_v8 }
 0x2fc   : > { %6554 = vmatmul.mubr.msk.f32.vlgmr.msra.gmra.mrb[48].mxu1 %vm2193_vm3, %v2189_v10 }
 0x2fd   : > { %6556 = vmatprep.mubr.msk.f32.mxu1 %vm2193_vm3, %v2190_v45  ;;  %6574 = vmatpush3.msra.mxu1 %v5798_v13 }
 0x2fe   : > { %6595 = vmatprep.subr.mxu1 %v5811_v14 }
 0x300   : > { %6557 = vmatmul.mubr.msk.f32.gmra.mrb[50].mxu1 %vm2193_vm3, %v2191_v46 }
 0x301   : > { %6575 = vmatprep.mubr.msk.f32.mxu1 %vm2193_vm3, %v2188_v8 }
 0x304   : > { %6576 = vmatmul.mubr.msk.f32.vlgmr.msra.gmra.mrb[52].mxu1 %vm2193_vm3, %v2189_v10 }
 0x305   : > { %6578 = vmatprep.mubr.msk.f32.mxu1 %vm2193_vm3, %v2190_v45  ;;  %6596 = vmatpush3.msra.mxu1 %v5811_v14  ;;  %v5805_v14 = vld [vmem:[%s8131_s4 + $0x90] sm:$0xff] }
 0x306   : > { %6617 = vmatprep.subr.mxu1 %v5824_v15 }
 0x308   : > { %6579 = vmatmul.mubr.msk.f32.gmra.mrb[54].mxu1 %vm2193_vm3, %v2191_v46 }
 0x309   : > { %6597 = vmatprep.mubr.msk.f32.mxu1 %vm2193_vm3, %v2188_v8 }
 0x30c   : > { %6598 = vmatmul.mubr.msk.f32.vlgmr.msra.gmra.mrb[56].mxu1 %vm2193_vm3, %v2189_v10 }
 0x30d   : > { %6600 = vmatprep.mubr.msk.f32.mxu1 %vm2193_vm3, %v2190_v45  ;;  %6618 = vmatpush3.msra.mxu1 %v5824_v15 }
 0x30e   : > { %6639 = vmatprep.subr.mxu1 %v5837_v16 }
 0x310   : > { %6601 = vmatmul.mubr.msk.f32.gmra.mrb[58].mxu1 %vm2193_vm3, %v2191_v46 }
 0x311   : > { %6619 = vmatprep.mubr.msk.f32.mxu1 %vm2193_vm3, %v2188_v8 }
 0x314   : > { %6620 = vmatmul.mubr.msk.f32.vlgmr.msra.gmra.mrb[60].mxu1 %vm2193_vm3, %v2189_v10 }
 0x315   : > { %6622 = vmatprep.mubr.msk.f32.mxu1 %vm2193_vm3, %v2190_v45  ;;  %6640 = vmatpush3.msra.mxu1 %v5837_v16 }
 0x316   : > { %6661 = vmatprep.subr.mxu1 %v5850_v17 }
 0x318   : > { %6623 = vmatmul.mubr.msk.f32.gmra.mrb[62].mxu1 %vm2193_vm3, %v2191_v46 }
 0x319   : > { %6641 = vmatprep.mubr.msk.f32.mxu1 %vm2193_vm3, %v2188_v8 }
 0x31c   : > { %6642 = vmatmul.mubr.msk.f32.vlgmr.msra.gmra.mrb[64].mxu1 %vm2193_vm3, %v2189_v10 }
 0x31d   : > { %6644 = vmatprep.mubr.msk.f32.mxu1 %vm2193_vm3, %v2190_v45  ;;  %6662 = vmatpush3.msra.mxu1 %v5850_v17  ;;  %v5806_v17 = vld [vmem:[%s8131_s4 + $0x98] sm:$0xff] }
 0x31e   : > { %7035 = vmatprep.subr.bf16.mxu1 %v7034_v21 }
 0x320   : > { %6645 = vmatmul.mubr.msk.f32.gmra.mrb[66].mxu1 %vm2193_vm3, %v2191_v46 }
 0x321   : > { %6663 = vmatprep.mubr.msk.f32.mxu1 %vm2193_vm3, %v2188_v8  ;;  %v5792_v8 = vld [vmem:[%s8131_s4 + $0x70] sm:$0xff] }
 0x324   : > { %6664 = vmatmul.mubr.msk.f32.vlgmr.msra.gmra.mrb[68].mxu1 %vm2193_vm3, %v2189_v10 }
 0x325   : > { %6666 = vmatprep.mubr.msk.f32.mxu1 %vm2193_vm3, %v2190_v45  ;;  %7037 = vmatpush3.bf16.msra.mxu1 %v7034_v21 }
 0x328   : > { %6667 = vmatmul.mubr.msk.f32.gmra.mrb[70].mxu1 %vm2193_vm3, %v2191_v46 }
 0x3b7   : > { %v6489_v22 = vpop.f32.mrb[36].mxu1 }
 0x3b8   : > { %v2272_v23 = vpop.f32.mrb[37].mxu1 }
 0x3b9   : > { %v6970_v24 = vpack.c.bf16 %v6489_v22, %v2272_v23  ;;  %v5817_v22 = vld [vmem:[%s8131_s4 + $0xa8] sm:$0xff] }
 0x3bb   : > { %v6492_v25 = vpop.f32.mrb[38].mxu1 }
 0x3bc   : > { %v2282_v26 = vpop.f32.mrb[39].mxu1 }
 0x3bd   : > { %v6974_v27 = vpack.c.bf16 %v6492_v25, %v2282_v26 }
 0x3bf   : > { %v6497_v28 = vpop.f32.mrb[40].mxu1 }
 0x3c0   : > { %v2363_v29 = vpop.f32.mrb[41].mxu1 }
 0x3c1   : > { %v6962_v30 = vpack.c.bf16 %v6497_v28, %v2363_v29  ;;  %v5829_v29 = vld [vmem:[%s8131_s4 + $0xc0] sm:$0xff] }
 0x3c3   : > { %v6500_v31 = vpop.f32.mrb[42].mxu1  ;;  %6963 = vmatprep.subr.bf16.mxu0 %v6962_v30 }
 0x3c4   : > { %v2373_v32 = vpop.f32.mrb[43].mxu1  ;;  %6965 = vmatpush3.bf16.msra.mxu0 %v6962_v30 }
 0x3c5   : > { %v6966_v33 = vpack.c.bf16 %v6500_v31, %v2373_v32  ;;  %v5830_v32 = vld [vmem:[%s8131_s4 + $0xc8] sm:$0xff] }
 0x3c7   : > { %6967 = vmatprep.subr.bf16.mxu0 %v6966_v33  ;;  %v6533_v34 = vpop.f32.mrb[44].mxu1 }
 0x3c8   : > { %6969 = vmatpush3.bf16.msra.mxu0 %v6966_v33  ;;  %v2649_v35 = vpop.f32.mrb[45].mxu1 }
 0x3c9   : > { %v6978_v37 = vpack.c.bf16 %v6533_v34, %v2649_v35  ;;  %6971 = vmatprep.subr.bf16.mxu0 %v6970_v24  ;;  %v5831_v34 = vld [vmem:[%s8131_s4 + $0xd0] sm:$0xff] }
 0x3cb   : > { %6510 = vmatmul.mubr.msk.f32.vlgmr.msra.gmra.mrb[8].mxu0 %vm593_vm2, %v5761_v36  ;;  %v6536_v39 = vpop.f32.mrb[46].mxu1 }
 0x3cc   : > { %6973 = vmatpush3.bf16.msra.mxu0 %v6970_v24  ;;  %v2659_v40 = vpop.f32.mrb[47].mxu1  ;;  %6512 = vmatprep.mubr.msk.f32.mxu0 %vm593_vm2, %v5762_v38  ;;  %v5818_v24 = vld [vmem:[%s8131_s4 + $0xb0] sm:$0xff] }
 0x3cd   : > { %v6982_v42 = vpack.c.bf16 %v6536_v39, %v2659_v40  ;;  %6975 = vmatprep.subr.bf16.mxu0 %v6974_v27  ;;  %v5842_v39 = vld [vmem:[%s8131_s4 + $0xe0] sm:$0xff]  ;;  %v5843_v40 = vld [vmem:[%s8131_s4 + $0xe8] sm:$0xff] }
 0x3cf   : > { %6513 = vmatmul.mubr.msk.f32.gmra.mrb[10].mxu0 %vm593_vm2, %v5763_v41  ;;  %v6555_v48 = vpop.f32.mrb[48].mxu1  ;;  %v5844_v41 = vld [vmem:[%s8131_s4 + $0xf0] sm:$0xff] }
 0x3d0   : > { %6977 = vmatpush3.bf16.msra.mxu0 %v6974_v27  ;;  %v2842_v49 = vpop.f32.mrb[49].mxu1  ;;  %6523 = vmatprep.mubr.msk.f32.mxu0 %vm593_vm2, %v2291_v43  ;;  %v5819_v27 = vld [vmem:[%s8131_s4 + $0xb8] sm:$0xff]  ;;  %v5855_v43 = vld [vmem:[%s8131_s4 + $0x100] sm:$0xff] }
 0x3d1   : > { %v6986_v51 = vpack.c.bf16 %v6555_v48, %v2842_v49  ;;  %6979 = vmatprep.subr.bf16.mxu0 %v6978_v37  ;;  %v5856_v48 = vld [vmem:[%s8131_s4 + $0x108] sm:$0xff]  ;;  %v5857_v49 = vld [vmem:[%s8131_s4 + $0x110] sm:$0xff] }
 0x3d3   : > { %6524 = vmatmul.mubr.msk.f32.vlgmr.msra.gmra.mrb[8].mxu0 %vm593_vm2, %v2292_v50  ;;  %v6558_v53 = vpop.f32.mrb[50].mxu1  ;;  %v5858_v50 = vld [vmem:[%s8131_s4 + $0x118] sm:$0xff] }
 0x3d4   : > { %6981 = vmatpush3.bf16.msra.mxu0 %v6978_v37  ;;  %v2852_v54 = vpop.f32.mrb[51].mxu1  ;;  %6526 = vmatprep.mubr.msk.f32.mxu0 %vm593_vm2, %v2293_v52  ;;  %v5832_v37 = vld [vmem:[%s8131_s4 + $0xd8] sm:$0xff] }
 0x3d5   : > { %v6990_v56 = vpack.c.bf16 %v6558_v53, %v2852_v54  ;;  %6983 = vmatprep.subr.bf16.mxu0 %v6982_v42  ;;  %v5867_v52 = vld [vmem:[%s8136_s9 + $0x18] sm:$0xff]  ;;  %v5868_v53 = vld [vmem:[%s8136_s9 + $0x20] sm:$0xff] }
 0x3d6   : > { %v7038_v54 = vpack.c.bf16 %v5868_v53, %v5867_v52 }
 0x3d7   : > { %6527 = vmatmul.mubr.msk.f32.gmra.mrb[10].mxu0 %vm593_vm2, %v2294_v55  ;;  %v6577_v58 = vpop.f32.mrb[52].mxu1  ;;  %v3944_v55 = vpop.permute.xlu1 %3943 }
 0x3d8   : > { %6985 = vmatpush3.bf16.msra.mxu0 %v6982_v42  ;;  %v3035_v59 = vpop.f32.mrb[53].mxu1  ;;  %6545 = vmatprep.mubr.msk.f32.mxu0 %vm593_vm2, %v5777_v57  ;;  %v5845_v42 = vld [vmem:[%s8131_s4 + $0xf8] sm:$0xff] }
 0x3d9   : > { %v6994_v61 = vpack.c.bf16 %v6577_v58, %v3035_v59  ;;  %6987 = vmatprep.subr.bf16.mxu0 %v6986_v51 }
 0x3db   : > { %6546 = vmatmul.mubr.msk.f32.vlgmr.msra.gmra.mrb[8].mxu0 %vm593_vm2, %v5778_v60  ;;  %v6580_v63 = vpop.f32.mrb[54].mxu1 }
 0x3dc   : > { %6989 = vmatpush3.bf16.msra.mxu0 %v6986_v51  ;;  %v3045_v0 = vpop.f32.mrb[55].mxu1  ;;  %6548 = vmatprep.mubr.msk.f32.mxu0 %vm593_vm2, %v5779_v62  ;;  %v3966_v51 = vld [vmem:[%s8136_s9 + $0x10] sm:$0xff] }
 0x3dd   : > { %v6998_v2 = vpack.c.bf16 %v6580_v63, %v3045_v0  ;;  %6991 = vmatprep.subr.bf16.mxu0 %v6990_v56  ;;  %6687 = vmatprep.subr.mxu1 %v3966_v51 }
 0x3de   : > { %6688 = vmatpush3.msra.mxu1 %v3966_v51  ;;  %v5933_v51 = vld [vmem:[%s8136_s9 + $0xd0] sm:$0xff] }
 0x3df   : > { %6549 = vmatmul.mubr.msk.f32.gmra.mrb[10].mxu0 %vm593_vm2, %v5780_v1  ;;  %v6599_v4 = vpop.f32.mrb[56].mxu1  ;;  %7039 = vmatprep.subr.bf16.mxu1 %v7038_v54 }
 0x3e0   : > { %6993 = vmatpush3.bf16.msra.mxu0 %v6990_v56  ;;  %v3228_v5 = vpop.f32.mrb[57].mxu1  ;;  %6567 = vmatprep.mubr.msk.f32.mxu0 %vm593_vm2, %v5790_v3  ;;  %v3939_v56 = vpop.permute.xlu0 %3938 }
 0x3e1   : > { %v7002_v7 = vpack.c.bf16 %v6599_v4, %v3228_v5  ;;  %6995 = vmatprep.subr.bf16.mxu0 %v6994_v61  ;;  %v5869_v5 = vld [vmem:[%s8136_s9 + $0x28] sm:$0xff] }
 0x3e3   : > { %6568 = vmatmul.mubr.msk.f32.vlgmr.msra.gmra.mrb[8].mxu0 %vm593_vm2, %v5791_v6  ;;  %v6602_v9 = vpop.f32.mrb[58].mxu1 }
 0x3e4   : > { %6997 = vmatpush3.bf16.msra.mxu0 %v6994_v61  ;;  %v3238_v10 = vpop.f32.mrb[59].mxu1  ;;  %6570 = vmatprep.mubr.msk.f32.mxu0 %vm593_vm2, %v5792_v8  ;;  %v3954_v61 = vpop.permute.xlu1 %3953  ;;  %v7231_v8 = vmov 0.0|0.0  }
 0x3e5   : > { %v7006_v12 = vpack.c.bf16 %v6602_v9, %v3238_v10  ;;  %6999 = vmatprep.subr.bf16.mxu0 %v6998_v2  ;;  %v3949_v0 = vpop.permute.xlu0 %3948  ;;  %v7233_v9 = vmov 0.0  }
 0x3e7   : > { %6571 = vmatmul.mubr.msk.f32.gmra.mrb[10].mxu0 %vm593_vm2, %v5793_v11  ;;  %v6621_v45 = vpop.f32.mrb[60].mxu1 }
 0x3e8   : > { %7001 = vmatpush3.bf16.msra.mxu0 %v6998_v2  ;;  %v3421_v46 = vpop.f32.mrb[61].mxu1  ;;  %6589 = vmatprep.mubr.msk.f32.mxu0 %vm593_vm2, %v5803_v44 }
 0x3e9   : > { %v7010_v13 = vpack.c.bf16 %v6621_v45, %v3421_v46  ;;  %7003 = vmatprep.subr.bf16.mxu0 %v7002_v7 }
 0x3eb   : > { %6590 = vmatmul.mubr.msk.f32.vlgmr.msra.gmra.mrb[8].mxu0 %vm593_vm2, %v5804_v47  ;;  %v6624_v15 = vpop.f32.mrb[62].mxu1 }
 0x3ec   : > { %7005 = vmatpush3.bf16.msra.mxu0 %v7002_v7  ;;  %v3431_v16 = vpop.f32.mrb[63].mxu1  ;;  %6592 = vmatprep.mubr.msk.f32.mxu0 %vm593_vm2, %v5805_v14 }
 0x3ed   : > { %v7014_v18 = vpack.c.bf16 %v6624_v15, %v3431_v16  ;;  %7007 = vmatprep.subr.bf16.mxu0 %v7006_v12  ;;  %v5877_v16 = vld [vmem:[%s8136_s9 + $0x30] sm:$0xff] }
 0x3ef   : > { %6593 = vmatmul.mubr.msk.f32.gmra.mrb[10].mxu0 %vm593_vm2, %v5806_v17  ;;  %v6643_v20 = vpop.f32.mrb[64].mxu1  ;;  %v5878_v17 = vld [vmem:[%s8136_s9 + $0x38] sm:$0xff] }
 0x3f0   : > { %7009 = vmatpush3.bf16.msra.mxu0 %v7006_v12  ;;  %v3614_v21 = vpop.f32.mrb[65].mxu1  ;;  %6611 = vmatprep.mubr.msk.f32.mxu0 %vm593_vm2, %v5816_v19 }
 0x3f1   : > { %v7018_v23 = vpack.c.bf16 %v6643_v20, %v3614_v21  ;;  %7011 = vmatprep.subr.bf16.mxu0 %v7010_v13  ;;  %v7054_v20 = vpack.c.bf16 %v5878_v17, %v5877_v16 }
 0x3f3   : > { %6612 = vmatmul.mubr.msk.f32.vlgmr.msra.gmra.mrb[8].mxu0 %vm593_vm2, %v5817_v22  ;;  %v6646_v25 = vpop.f32.mrb[66].mxu1  ;;  %v5874_v22 = vld [vmem:[%s8134_s7 + $0x4] sm:$0x7] }
 0x3f4   : > { %7013 = vmatpush3.bf16.msra.mxu0 %v7010_v13  ;;  %v3624_v26 = vpop.f32.mrb[67].mxu1  ;;  %6614 = vmatprep.mubr.msk.f32.mxu0 %vm593_vm2, %v5818_v24  ;;  %v4065_v13 = vld [vmem:[%s8134_s7] sm:$0x7]  ;;  %v5886_v24 = vld [vmem:[%s8136_s9 + $0x48] sm:$0xff] }
 0x3f5   : > { %v7022_v28 = vpack.c.bf16 %v6646_v25, %v3624_v26  ;;  %7015 = vmatprep.subr.bf16.mxu0 %v7014_v18  ;;  %v5887_v25 = vld [vmem:[%s8136_s9 + $0x50] sm:$0xff] }
 0x3f6   : > { %v7064_v26 = vpack.c.bf16 %v5887_v25, %v5886_v24 }
 0x3f7   : > { %6615 = vmatmul.mubr.msk.f32.gmra.mrb[10].mxu0 %vm593_vm2, %v5819_v27  ;;  %v6665_v30 = vpop.f32.mrb[68].mxu1  ;;  %v5888_v27 = vld [vmem:[%s8136_s9 + $0x58] sm:$0xff] }
 0x3f8   : > { %7017 = vmatpush3.bf16.msra.mxu0 %v7014_v18  ;;  %v3807_v31 = vpop.f32.mrb[69].mxu1  ;;  %6633 = vmatprep.mubr.msk.f32.mxu0 %vm593_vm2, %v5829_v29  ;;  %v5896_v29 = vld [vmem:[%s8136_s9 + $0x68] sm:$0xff] }
 0x3f9   : > { %v7026_v33 = vpack.c.bf16 %v6665_v30, %v3807_v31  ;;  %7019 = vmatprep.subr.bf16.mxu0 %v7018_v23  ;;  %v5897_v31 = vld [vmem:[%s8136_s9 + $0x70] sm:$0xff] }
 0x3fb   : > { %6634 = vmatmul.mubr.msk.f32.vlgmr.msra.gmra.mrb[8].mxu0 %vm593_vm2, %v5830_v32  ;;  %v6668_v35 = vpop.f32.mrb[70].mxu1  ;;  %v5904_v32 = vld [vmem:[%s8136_s9 + $0x78] sm:$0xff] }
 0x3fc   : > { %7021 = vmatpush3.bf16.msra.mxu0 %v7018_v23  ;;  %v3817_v36 = vpop.f32.mrb[71].mxu1  ;;  %6636 = vmatprep.mubr.msk.f32.mxu0 %vm593_vm2, %v5831_v34  ;;  %v5879_v23 = vld [vmem:[%s8136_s9 + $0x40] sm:$0xff] }
 0x3fd   : > { %v7030_v38 = vpack.c.bf16 %v6668_v35, %v3817_v36  ;;  %7023 = vmatprep.subr.bf16.mxu0 %v7022_v28  ;;  %v5906_v35 = vld [vmem:[%s8136_s9 + $0x88] sm:$0xff]  ;;  %v5913_v36 = vld [vmem:[%s8136_s9 + $0x90] sm:$0xff] }
 0x3ff   : > { %6637 = vmatmul.mubr.msk.f32.gmra.mrb[10].mxu0 %vm593_vm2, %v5832_v37  ;;  %v5914_v37 = vld [vmem:[%s8136_s9 + $0x98] sm:$0xff] }
 0x400   : > { %7025 = vmatpush3.bf16.msra.mxu0 %v7022_v28  ;;  %6655 = vmatprep.mubr.msk.f32.mxu0 %vm593_vm2, %v5842_v39  ;;  %v5895_v28 = vld [vmem:[%s8136_s9 + $0x60] sm:$0xff] }
 0x401   : > { %7027 = vmatprep.subr.bf16.mxu0 %v7026_v33  ;;  %v7074_v30 = vpack.c.bf16 %v5896_v29, %v5895_v28  ;;  %v5915_v39 = vld [vmem:[%s8136_s9 + $0xa0] sm:$0xff] }
 0x403   : > { %6656 = vmatmul.mubr.msk.f32.vlgmr.msra.gmra.mrb[8].mxu0 %vm593_vm2, %v5843_v40  ;;  %v5922_v40 = vld [vmem:[%s8136_s9 + $0xa8] sm:$0xff] }
 0x404   : > { %7029 = vmatpush3.bf16.msra.mxu0 %v7026_v33  ;;  %6658 = vmatprep.mubr.msk.f32.mxu0 %vm593_vm2, %v5844_v41  ;;  %v5905_v33 = vld [vmem:[%s8136_s9 + $0x80] sm:$0xff]  ;;  %v5923_v41 = vld [vmem:[%s8136_s9 + $0xb0] sm:$0xff] }
 0x405   : > { %7031 = vmatprep.subr.bf16.mxu0 %v7030_v38  ;;  %v7084_v34 = vpack.c.bf16 %v5905_v33, %v5904_v32  ;;  %v5929_v33 = vld [vmem:[%s8134_s7 + $0x1c] sm:$0x7] }
 0x407   : > { %6659 = vmatmul.mubr.msk.f32.gmra.mrb[10].mxu0 %vm593_vm2, %v5845_v42  ;;  %v7104_v42 = vpack.c.bf16 %v5923_v41, %v5922_v40  ;;  %v5467_v40 = vld [vmem:[%s8137_s10 + $0x8] sm:$0xff]  ;;  %v5469_v41 = vld [vmem:[%s8137_s10 + $0x18] sm:$0xff] }
 0x408   : > { %7033 = vmatpush3.bf16.msra.mxu0 %v7030_v38  ;;  %6677 = vmatprep.mubr.msk.f32.mxu0 %vm593_vm2, %v5855_v43  ;;  %v7094_v38 = vpack.c.bf16 %v5914_v37, %v5913_v36  ;;  %v5924_v43 = vld [vmem:[%s8136_s9 + $0xb8] sm:$0xff] }
 0x409   : > { %7042 = vmatprep.subr.bf16.mxu0 %v7231_v8 }
 0x40b   : > { %6678 = vmatmul.mubr.msk.f32.vlgmr.msra.gmra.mrb[8].mxu0 %vm593_vm2, %v5856_v48  ;;  %v5931_v48 = vld [vmem:[%s8136_s9 + $0xc0] sm:$0xff] }
 0x40c   : > { %6680 = vmatprep.mubr.msk.f32.mxu0 %vm593_vm2, %v5857_v49  ;;  %v5932_v49 = vld [vmem:[%s8136_s9 + $0xc8] sm:$0xff] }
 0x40f   : > { %6681 = vmatmul.mubr.msk.f32.gmra.mrb[10].mxu0 %vm593_vm2, %v5858_v50  ;;  %v7114_v50 = vpack.c.bf16 %v5932_v49, %v5931_v48  ;;  %v5473_v49 = vld [vmem:[%s8137_s10 + $0x38] sm:$0xff] }
 0x410   : > { %6715 = vmatprep.mubr.msk.f32.mxu0 %vm7232_vm5, %v7233_v9 }
 0x4de   : > { %v6679_v57 = vpop.f32.mrb[8].mxu0 }
 0x4df   : > { %v3957_v58 = vadd.f32 %v6679_v57, %v3944_v55  ;;  %v3909_v59 = vpop.f32.mrb[9].mxu0 }
 0x4e0   : > { %v3956_v60 = vadd.f32 %v3939_v56, %v3909_v59 }
 0x4e1   : > { %v7840_v1 = vmax.f32 %v3957_v58, 0.0 }
 0x4e2   : > { %v7838_v62 = vmax.f32 %v3956_v60, 0.0  ;;  %v6682_v63 = vpop.f32.mrb[10].mxu0 }
 0x4e3   : > { %v3959_v2 = vadd.f32 %v6682_v63, %v3954_v61  ;;  %v3919_v3 = vpop.f32.mrb[11].mxu0 }
 0x4e4   : > { %v3958_v4 = vadd.f32 %v3949_v0, %v3919_v3  ;;  %6689 = vmatprep.mubr.msk.f32.mxu1 %vm3967_vm4, %v7838_v62  ;;  %v5884_v0 = vld [vmem:[%s8134_s7 + $0x8] sm:$0x7] }
 0x4e5   : > { %6690 = vmatmul.mubr.msk.f32.vlgmr.msra.gmra.mrb[72].mxu1 %vm3967_vm4, %v7840_v1  ;;  %v7851_v7 = vmax.f32 %v3959_v2, 0.0 }
 0x4e6   : > { %v7849_v6 = vmax.f32 %v3958_v4, 0.0  ;;  %7041 = vmatpush3.bf16.msra.mxu1 %v7038_v54 }
 0x4e7   : > { %6699 = vmatprep.subr.mxu1 %v5869_v5 }
 0x4e8   : > { %6692 = vmatprep.mubr.msk.f32.mxu1 %vm3967_vm4, %v7849_v6 }
 0x4e9   : > { %6693 = vmatmul.mubr.msk.f32.gmra.mrb[74].mxu1 %vm3967_vm4, %v7851_v7 }
 0x4ea   : > { %6700 = vmatpush3.msra.mxu1 %v5869_v5  ;;  %6701 = vmatprep.mubr.msk.f32.mxu1 %vm3967_vm4, %v7838_v62 }
 0x4eb   : > { %7048 = vmatprep.subr.bf16.mxu1 %v7231_v8 }
 0x4ed   : > { %6702 = vmatmul.mubr.msk.f32.vlgmr.msra.gmra.mrb[76].mxu1 %vm3967_vm4, %v7840_v1 }
 0x4ee   : > { %6704 = vmatprep.mubr.msk.f32.mxu1 %vm3967_vm4, %v7849_v6 }
 0x4f1   : > { %6705 = vmatmul.mubr.msk.f32.gmra.mrb[78].mxu1 %vm3967_vm4, %v7851_v7 }
 0x4f2   : > { %6726 = vmatprep.mubr.msk.f32.mxu1 %vm7232_vm5, %v7233_v9 }
 0x5b8   : > { %v6691_v10 = vpop.f32.mrb[72].mxu1 }
 0x5b9   : > { %v4046_v11 = vpop.f32.mrb[73].mxu1 }
 0x5ba   : > { %v7049_v12 = vpack.c.bf16 %v6691_v10, %v4046_v11 }
 0x5bc   : > { %v6694_v44 = vpop.f32.mrb[74].mxu1  ;;  %7050 = vmatpush3.bf16.msra.mxu1 %v7049_v12 }
 0x5bd   : > { %v4056_v45 = vpop.f32.mrb[75].mxu1  ;;  %7051 = vmatprep.subr.bf16.mxu1 %v7231_v8 }
 0x5be   : > { %v7052_v46 = vpack.c.bf16 %v6694_v44, %v4056_v45 }
 0x5c0   : > { %v6703_v47 = vpop.f32.mrb[76].mxu1  ;;  %7053 = vmatpush3.bf16.msra.mxu1 %v7052_v46 }
 0x5c1   : > { %v4136_v14 = vpop.f32.mrb[77].mxu1  ;;  %7058 = vmatprep.subr.bf16.mxu1 %v7231_v8 }
 0x5c2   : > { %v7043_v15 = vpack.c.bf16 %v6703_v47, %v4136_v14  ;;  %v5902_v47 = vld [vmem:[%s8134_s7 + $0x10] sm:$0x7] }
 0x5c3   : > { %6727 = vmatmul.mubr.msk.f32.vlgmr.msra.gmra.mrb[80].mxu1 %vm593_vm2, %v4065_v13 }
 0x5c4   : > { %v6706_v18 = vpop.f32.mrb[78].mxu1  ;;  %7044 = vmatpush3.bf16.msra.mxu0 %v7043_v15  ;;  %6749 = vmatprep.mubr.msk.f32.mxu1 %vm7232_vm5, %v7233_v9 }
 0x5c5   : > { %v4146_v19 = vpop.f32.mrb[79].mxu1  ;;  %7045 = vmatprep.subr.bf16.mxu0 %v7231_v8 }
 0x5c6   : > { %v7046_v21 = vpack.c.bf16 %v6706_v18, %v4146_v19  ;;  %v5911_v19 = vld [vmem:[%s8134_s7 + $0x14] sm:$0x7] }
 0x5c8   : > { %7047 = vmatpush3.bf16.msra.mxu0 %v7046_v21 }
 0x5c9   : > { %7055 = vmatprep.subr.bf16.mxu0 %v7054_v20 }
 0x5cb   : > { %6716 = vmatmul.mubr.msk.f32.vlgmr.msra.gmra.mrb[12].mxu0 %vm593_vm2, %v5874_v22 }
 0x5cc   : > { %7057 = vmatpush3.bf16.msra.mxu0 %v7054_v20  ;;  %6735 = vmatprep.mubr.msk.f32.mxu0 %vm3967_vm4, %v7838_v62 }
 0x5cd   : > { %6733 = vmatprep.subr.mxu0 %v5879_v23 }
 0x5d0   : > { %6734 = vmatpush3.msra.mxu0 %v5879_v23 }
 0x5d1   : > { %6736 = vmatmul.mubr.msk.f32.vlgmr.msra.gmra.mrb[14].mxu0 %vm3967_vm4, %v7840_v1  ;;  %7065 = vmatprep.subr.bf16.mxu0 %v7064_v26 }
 0x5d2   : > { %6738 = vmatprep.mubr.msk.f32.mxu0 %vm3967_vm4, %v7849_v6  ;;  %7067 = vmatpush3.bf16.msra.mxu0 %v7064_v26  ;;  %v5920_v26 = vld [vmem:[%s8134_s7 + $0x18] sm:$0x7] }
 0x5d3   : > { %6756 = vmatprep.subr.mxu0 %v5888_v27 }
 0x5d5   : > { %6739 = vmatmul.mubr.msk.f32.gmra.mrb[16].mxu0 %vm3967_vm4, %v7851_v7 }
 0x5d6   : > { %6757 = vmatpush3.msra.mxu0 %v5888_v27  ;;  %6758 = vmatprep.mubr.msk.f32.mxu0 %vm3967_vm4, %v7838_v62 }
 0x5d7   : > { %7075 = vmatprep.subr.bf16.mxu0 %v7074_v30 }
 0x5d9   : > { %6759 = vmatmul.mubr.msk.f32.vlgmr.msra.gmra.mrb[18].mxu0 %vm3967_vm4, %v7840_v1 }
 0x5da   : > { %6761 = vmatprep.mubr.msk.f32.mxu0 %vm3967_vm4, %v7849_v6  ;;  %7077 = vmatpush3.bf16.msra.mxu0 %v7074_v30 }
 0x5db   : > { %6779 = vmatprep.subr.mxu0 %v5897_v31 }
 0x5dd   : > { %6762 = vmatmul.mubr.msk.f32.gmra.mrb[20].mxu0 %vm3967_vm4, %v7851_v7 }
 0x5de   : > { %6780 = vmatpush3.msra.mxu0 %v5897_v31  ;;  %6781 = vmatprep.mubr.msk.f32.mxu0 %vm3967_vm4, %v7838_v62 }
 0x5df   : > { %7085 = vmatprep.subr.bf16.mxu0 %v7084_v34 }
 0x5e1   : > { %6782 = vmatmul.mubr.msk.f32.vlgmr.msra.gmra.mrb[22].mxu0 %vm3967_vm4, %v7840_v1 }
 0x5e2   : > { %6784 = vmatprep.mubr.msk.f32.mxu0 %vm3967_vm4, %v7849_v6  ;;  %7087 = vmatpush3.bf16.msra.mxu0 %v7084_v34 }
 0x5e3   : > { %6802 = vmatprep.subr.mxu0 %v5906_v35 }
 0x5e5   : > { %6785 = vmatmul.mubr.msk.f32.gmra.mrb[24].mxu0 %vm3967_vm4, %v7851_v7 }
 0x5e6   : > { %6803 = vmatpush3.msra.mxu0 %v5906_v35  ;;  %6804 = vmatprep.mubr.msk.f32.mxu0 %vm3967_vm4, %v7838_v62 }
 0x5e7   : > { %7095 = vmatprep.subr.bf16.mxu0 %v7094_v38 }
 0x5e9   : > { %6805 = vmatmul.mubr.msk.f32.vlgmr.msra.gmra.mrb[26].mxu0 %vm3967_vm4, %v7840_v1 }
 0x5ea   : > { %6807 = vmatprep.mubr.msk.f32.mxu0 %vm3967_vm4, %v7849_v6  ;;  %7097 = vmatpush3.bf16.msra.mxu0 %v7094_v38 }
 0x5eb   : > { %6825 = vmatprep.subr.mxu0 %v5915_v39 }
 0x5ed   : > { %6808 = vmatmul.mubr.msk.f32.gmra.mrb[28].mxu0 %vm3967_vm4, %v7851_v7 }
 0x5ee   : > { %6826 = vmatpush3.msra.mxu0 %v5915_v39  ;;  %6827 = vmatprep.mubr.msk.f32.mxu0 %vm3967_vm4, %v7838_v62  ;;  %v5938_v39 = vld [vmem:[%s8134_s7 + $0x20] sm:$0x7] }
 0x5ef   : > { %7105 = vmatprep.subr.bf16.mxu0 %v7104_v42 }
 0x5f1   : > { %6828 = vmatmul.mubr.msk.f32.vlgmr.msra.gmra.mrb[30].mxu0 %vm3967_vm4, %v7840_v1 }
 0x5f2   : > { %6830 = vmatprep.mubr.msk.f32.mxu0 %vm3967_vm4, %v7849_v6  ;;  %7107 = vmatpush3.bf16.msra.mxu0 %v7104_v42  ;;  %v5468_v42 = vld [vmem:[%s8137_s10 + $0x10] sm:$0xff] }
 0x5f3   : > { %6848 = vmatprep.subr.mxu0 %v5924_v43 }
 0x5f5   : > { %6831 = vmatmul.mubr.msk.f32.gmra.mrb[32].mxu0 %vm3967_vm4, %v7851_v7 }
 0x5f6   : > { %6849 = vmatpush3.msra.mxu0 %v5924_v43  ;;  %6850 = vmatprep.mubr.msk.f32.mxu0 %vm3967_vm4, %v7838_v62  ;;  %v5471_v43 = vld [vmem:[%s8137_s10 + $0x28] sm:$0xff] }
 0x5f7   : > { %7115 = vmatprep.subr.bf16.mxu0 %v7114_v50 }
 0x5f9   : > { %6851 = vmatmul.mubr.msk.f32.vlgmr.msra.gmra.mrb[34].mxu0 %vm3967_vm4, %v7840_v1 }
 0x5fa   : > { %6853 = vmatprep.mubr.msk.f32.mxu0 %vm3967_vm4, %v7849_v6  ;;  %7117 = vmatpush3.bf16.msra.mxu0 %v7114_v50  ;;  %v7128_v50 = vpack.c.bf16 %v5473_v49, %v5471_v43 }
 0x5fb   : > { %6871 = vmatprep.subr.mxu0 %v5933_v51 }
 0x5fd   : > { %6854 = vmatmul.mubr.msk.f32.gmra.mrb[36].mxu0 %vm3967_vm4, %v7851_v7 }
 0x5fe   : > { %6872 = vmatpush3.msra.mxu0 %v5933_v51  ;;  %6873 = vmatprep.mubr.msk.f32.mxu0 %vm3967_vm4, %v7838_v62  ;;  %v5470_v51 = vld [vmem:[%s8137_s10 + $0x20] sm:$0xff] }
 0x601   : > { %6874 = vmatmul.mubr.msk.f32.vlgmr.msra.gmra.mrb[38].mxu0 %vm3967_vm4, %v7840_v1 }
 0x602   : > { %6876 = vmatprep.mubr.msk.f32.mxu0 %vm3967_vm4, %v7849_v6 }
 0x605   : > { %6877 = vmatmul.mubr.msk.f32.gmra.mrb[40].mxu0 %vm3967_vm4, %v7851_v7  ;;  %v5893_v7 = vld [vmem:[%s8134_s7 + $0xc] sm:$0x7] }
 0x606   : > { %5554 = vmatprep.mubr.f32.mxu0 %v7233_v9 }
 0x696   : > { %v4299_v52 = vpop.f32.mrb[80].mxu1 }
 0x697   : > { %v6728_v53 = vpop.f32.mrb[81].mxu1 }
 0x69e   : > { %v4226_v54 = vpop.f32.mrb[12].mxu0 }
 0x69f   : > { %v6717_v55 = vpop.f32.mrb[13].mxu0  ;;  %v8004_v56 = vadd.f32 %v4299_v52, %v4226_v54  ;;  %v5472_v52 = vld [vmem:[%s8137_s10 + $0x30] sm:$0xff]  ;;  %v5475_v54 = vld [vmem:[%s8137_s10 + $0x48] sm:$0xff] }
 0x6a0   : > { %v7130_v53 = vpack.c.bf16 %v5472_v52, %v5470_v51  ;;  %v5477_v55 = vld [vmem:[%s8137_s10 + $0x58] sm:$0xff] }
 0x6a4   : > { %v6737_v57 = vpop.f32.mrb[14].mxu0 }
 0x6a5   : > { %v4373_v58 = vpop.f32.mrb[15].mxu0 }
 0x6a6   : > { %v7059_v59 = vpack.c.bf16 %v6737_v57, %v4373_v58  ;;  %v7132_v57 = vpack.c.bf16 %v5477_v55, %v5475_v54  ;;  %v5474_v58 = vld [vmem:[%s8137_s10 + $0x40] sm:$0xff] }
 0x6a8   : > { %v6740_v60 = vpop.f32.mrb[16].mxu0  ;;  %7060 = vmatpush3.bf16.msra.mxu1 %v7059_v59  ;;  %v5476_v59 = vld [vmem:[%s8137_s10 + $0x50] sm:$0xff] }
 0x6a9   : > { %v4383_v61 = vpop.f32.mrb[17].mxu0  ;;  %7061 = vmatprep.subr.bf16.mxu1 %v7231_v8 }
 0x6aa   : > { %v7062_v62 = vpack.c.bf16 %v6740_v60, %v4383_v61  ;;  %v5479_v60 = vld [vmem:[%s8137_s10 + $0x68] sm:$0xff]  ;;  %v7134_v61 = vpack.c.bf16 %v5476_v59, %v5474_v58 }
 0x6ac   : > { %7063 = vmatpush3.bf16.msra.mxu1 %v7062_v62  ;;  %v6760_v63 = vpop.f32.mrb[18].mxu0  ;;  %v5481_v62 = vld [vmem:[%s8137_s10 + $0x78] sm:$0xff] }
 0x6ad   : > { %v4538_v1 = vpop.f32.mrb[19].mxu0  ;;  %7068 = vmatprep.subr.bf16.mxu1 %v7231_v8 }
 0x6ae   : > { %v7069_v2 = vpack.c.bf16 %v6760_v63, %v4538_v1  ;;  %v7136_v63 = vpack.c.bf16 %v5481_v62, %v5479_v60  ;;  %v5480_v1 = vld [vmem:[%s8137_s10 + $0x70] sm:$0xff] }
 0x6af   : > { %6750 = vmatmul.mubr.msk.f32.vlgmr.msra.gmra.mrb[82].mxu1 %vm593_vm2, %v5884_v0  ;;  %v5478_v0 = vld [vmem:[%s8137_s10 + $0x60] sm:$0xff] }
 0x6b0   : > { %v6763_v3 = vpop.f32.mrb[20].mxu0  ;;  %7070 = vmatpush3.bf16.msra.mxu1 %v7069_v2  ;;  %6772 = vmatprep.mubr.msk.f32.mxu1 %vm7232_vm5, %v7233_v9  ;;  %v7138_v2 = vpack.c.bf16 %v5480_v1, %v5478_v0 }
 0x6b1   : > { %v4548_v4 = vpop.f32.mrb[21].mxu0  ;;  %7071 = vmatprep.subr.bf16.mxu1 %v7231_v8 }
 0x6b2   : > { %v7072_v5 = vpack.c.bf16 %v6763_v3, %v4548_v4  ;;  %v5483_v3 = vld [vmem:[%s8137_s10 + $0x88] sm:$0xff]  ;;  %v5485_v4 = vld [vmem:[%s8137_s10 + $0x98] sm:$0xff] }
 0x6b4   : > { %7073 = vmatpush3.bf16.msra.mxu1 %v7072_v5  ;;  %v6783_v6 = vpop.f32.mrb[22].mxu0  ;;  %v7140_v5 = vpack.c.bf16 %v5485_v4, %v5483_v3 }
 0x6b5   : > { %v4703_v10 = vpop.f32.mrb[23].mxu0  ;;  %7078 = vmatprep.subr.bf16.mxu1 %v7231_v8 }
 0x6b6   : > { %v7079_v11 = vpack.c.bf16 %v6783_v6, %v4703_v10  ;;  %v5482_v6 = vld [vmem:[%s8137_s10 + $0x80] sm:$0xff] }
 0x6b7   : > { %6773 = vmatmul.mubr.msk.f32.vlgmr.msra.gmra.mrb[84].mxu1 %vm593_vm2, %v5893_v7  ;;  %v5484_v7 = vld [vmem:[%s8137_s10 + $0x90] sm:$0xff] }
 0x6b8   : > { %v6786_v12 = vpop.f32.mrb[24].mxu0  ;;  %7080 = vmatpush3.bf16.msra.mxu1 %v7079_v11  ;;  %6795 = vmatprep.mubr.msk.f32.mxu1 %vm7232_vm5, %v7233_v9  ;;  %v7142_v10 = vpack.c.bf16 %v5484_v7, %v5482_v6 }
 0x6b9   : > { %v4713_v44 = vpop.f32.mrb[25].mxu0  ;;  %7081 = vmatprep.subr.bf16.mxu1 %v7231_v8 }
 0x6ba   : > { %v7082_v45 = vpack.c.bf16 %v6786_v12, %v4713_v44 }
 0x6bc   : > { %7083 = vmatpush3.bf16.msra.mxu1 %v7082_v45  ;;  %v6806_v46 = vpop.f32.mrb[26].mxu0 }
 0x6bd   : > { %v4868_v13 = vpop.f32.mrb[27].mxu0  ;;  %7088 = vmatprep.subr.bf16.mxu1 %v7231_v8 }
 0x6be   : > { %v7089_v14 = vpack.c.bf16 %v6806_v46, %v4868_v13 }
 0x6bf   : > { %6796 = vmatmul.mubr.msk.f32.vlgmr.msra.gmra.mrb[86].mxu1 %vm593_vm2, %v5902_v47 }
 0x6c0   : > { %v6809_v15 = vpop.f32.mrb[28].mxu0  ;;  %7090 = vmatpush3.bf16.msra.mxu1 %v7089_v14  ;;  %6818 = vmatprep.mubr.msk.f32.mxu1 %vm7232_vm5, %v7233_v9 }
 0x6c1   : > { %v4878_v16 = vpop.f32.mrb[29].mxu0  ;;  %7091 = vmatprep.subr.bf16.mxu1 %v7231_v8 }
 0x6c2   : > { %v7092_v17 = vpack.c.bf16 %v6809_v15, %v4878_v16 }
 0x6c4   : > { %7093 = vmatpush3.bf16.msra.mxu1 %v7092_v17  ;;  %v6829_v18 = vpop.f32.mrb[30].mxu0 }
 0x6c5   : > { %v5033_v20 = vpop.f32.mrb[31].mxu0  ;;  %7098 = vmatprep.subr.bf16.mxu1 %v7231_v8 }
 0x6c6   : > { %v7099_v21 = vpack.c.bf16 %v6829_v18, %v5033_v20 }
 0x6c7   : > { %6819 = vmatmul.mubr.msk.f32.vlgmr.msra.gmra.mrb[88].mxu1 %vm593_vm2, %v5911_v19 }
 0x6c8   : > { %v6832_v22 = vpop.f32.mrb[32].mxu0  ;;  %7100 = vmatpush3.bf16.msra.mxu1 %v7099_v21  ;;  %6841 = vmatprep.mubr.msk.f32.mxu1 %vm7232_vm5, %v7233_v9 }
 0x6c9   : > { %v5043_v23 = vpop.f32.mrb[33].mxu0  ;;  %7101 = vmatprep.subr.bf16.mxu1 %v7231_v8 }
 0x6ca   : > { %v7102_v24 = vpack.c.bf16 %v6832_v22, %v5043_v23 }
 0x6cc   : > { %7103 = vmatpush3.bf16.msra.mxu1 %v7102_v24  ;;  %v6852_v25 = vpop.f32.mrb[34].mxu0 }
 0x6cd   : > { %v5198_v27 = vpop.f32.mrb[35].mxu0  ;;  %7108 = vmatprep.subr.bf16.mxu1 %v7231_v8 }
 0x6ce   : > { %v7109_v28 = vpack.c.bf16 %v6852_v25, %v5198_v27  ;;  %v5462_v27 = vpop.permute.xlu0 %5461 }
 0x6cf   : > { %6842 = vmatmul.mubr.msk.f32.vlgmr.msra.gmra.mrb[90].mxu1 %vm593_vm2, %v5920_v26 }
 0x6d0   : > { %v6855_v29 = vpop.f32.mrb[36].mxu0  ;;  %7110 = vmatpush3.bf16.msra.mxu1 %v7109_v28  ;;  %6864 = vmatprep.mubr.msk.f32.mxu1 %vm7232_vm5, %v7233_v9 }
 0x6d1   : > { %v5208_v30 = vpop.f32.mrb[37].mxu0  ;;  %7111 = vmatprep.subr.bf16.mxu1 %v7231_v8 }
 0x6d2   : > { %v7112_v31 = vpack.c.bf16 %v6855_v29, %v5208_v30 }
 0x6d4   : > { %7113 = vmatpush3.bf16.msra.mxu1 %v7112_v31  ;;  %v6875_v32 = vpop.f32.mrb[38].mxu0 }
 0x6d5   : > { %v5363_v34 = vpop.f32.mrb[39].mxu0  ;;  %7118 = vmatprep.subr.bf16.mxu1 %v7231_v8 }
 0x6d6   : > { %v7119_v35 = vpack.c.bf16 %v6875_v32, %v5363_v34 }
 0x6d7   : > { %6865 = vmatmul.mubr.msk.f32.vlgmr.msra.gmra.mrb[92].mxu1 %vm593_vm2, %v5929_v33 }
 0x6d8   : > { %v6878_v36 = vpop.f32.mrb[40].mxu0  ;;  %7120 = vmatpush3.bf16.msra.mxu1 %v7119_v35  ;;  %6887 = vmatprep.mubr.msk.f32.mxu1 %vm7232_vm5, %v7233_v9  ;;  %v7124_v9 = vpack.c.bf16 %v5469_v41, %v5467_v40 }
 0x6d9   : > { %v5373_v37 = vpop.f32.mrb[41].mxu0  ;;  %7121 = vmatprep.subr.bf16.mxu1 %v7231_v8  ;;  %v5466_v8 = vld [vmem:[%s8137_s10] sm:$0xff] }
 0x6da   : > { %v7122_v38 = vpack.c.bf16 %v6878_v36, %v5373_v37  ;;  %v7126_v48 = vpack.c.bf16 %v5468_v42, %v5466_v8  ;;  %7125 = vmatprep.subr.bf16.mxu0 %v7124_v9 }
 0x6dc   : > { %7123 = vmatpush3.bf16.msra.mxu1 %v7122_v38  ;;  %7127 = vmatpush1.bf16.msra.mxu0 %v7126_v48 }
 0x6dd   : > { %7129 = vmatprep.subr.bf16.mxu0 %v7128_v50 }
 0x6df   : > { %6888 = vmatmul.mubr.msk.f32.vlgmr.msra.gmra.mrb[94].mxu1 %vm593_vm2, %v5938_v39 }
 0x6e0   : > { %7131 = vmatpush1.bf16.msra.mxu0 %v7130_v53 }
 0x6e1   : > { %7133 = vmatprep.subr.bf16.mxu0 %v7132_v57 }
 0x6e4   : > { %7135 = vmatpush1.bf16.msra.mxu0 %v7134_v61 }
 0x6e5   : > { %7137 = vmatprep.subr.bf16.mxu0 %v7136_v63 }
 0x6e8   : > { %7139 = vmatpush1.bf16.msra.mxu0 %v7138_v2 }
 0x6e9   : > { %7141 = vmatprep.subr.bf16.mxu0 %v7140_v5 }
 0x6ec   : > { %7143 = vmatpush1.bf16.msra.mxu0 %v7142_v10 }
 0x782   : > { %v4463_v11 = vpop.f32.mrb[82].mxu1 }
 0x783   : > { %v4467_v12 = vadd.f32 %v4463_v11, %v8004_v56  ;;  %v6751_v44 = vpop.f32.mrb[83].mxu1 }
 0x78a   : > { %v4628_v45 = vpop.f32.mrb[84].mxu1 }
 0x78b   : > { %v4632_v46 = vadd.f32 %v4628_v45, %v4467_v12  ;;  %v6774_v47 = vpop.f32.mrb[85].mxu1 }
 0x792   : > { %v4793_v13 = vpop.f32.mrb[86].mxu1 }
 0x793   : > { %v4797_v14 = vadd.f32 %v4793_v13, %v4632_v46  ;;  %v6797_v15 = vpop.f32.mrb[87].mxu1 }
 0x79a   : > { %v4958_v16 = vpop.f32.mrb[88].mxu1 }
 0x79b   : > { %v4962_v17 = vadd.f32 %v4958_v16, %v4797_v14  ;;  %v6820_v18 = vpop.f32.mrb[89].mxu1 }
 0x7a2   : > { %v5123_v19 = vpop.f32.mrb[90].mxu1 }
 0x7a3   : > { %v5127_v20 = vadd.f32 %v5123_v19, %v4962_v17  ;;  %v6843_v21 = vpop.f32.mrb[91].mxu1 }
 0x7aa   : > { %v5288_v22 = vpop.f32.mrb[92].mxu1 }
 0x7ab   : > { %v5292_v23 = vadd.f32 %v5288_v22, %v5127_v20  ;;  %v6866_v24 = vpop.f32.mrb[93].mxu1 }
 0x7b2   : > { %v5453_v25 = vpop.f32.mrb[94].mxu1 }
 0x7b3   : > { %v5457_v26 = vadd.f32 %v5453_v25, %v5292_v23  ;;  %v6889_v56 = vpop.f32.mrb[95].mxu1 }
 0x7b5   : > { %v5464_v28 = vadd.f32 %v5462_v27, %v5457_v26 }
 0x7b7   : > { %v5465_v29 = vmax.f32 %v5464_v28, 0.0 }
 0x7b9   : > { %5940 = vmatmul.mubr.msk.f32.vlgmr.msra.gmra.mrb[42].mxu0 %vm5486_vm6, %v5465_v29 }
 0x88c   : > { %v5556_v30 = vpop.f32.mrb[42].mxu0 }
 0x88d   : > { %v5558_v31 = vpop.f32.mrb[43].mxu0 }
 0x88e   : > { %v5563_v32 = vcombine.low %v5556_v30, %v5558_v31 }
 0x890   : > { %5565 = vst [vmem:[%s386_s30] sm:$0x77] %v5563_v32 }
 0x891 PF: > { %s21_s17 = sadd.s32 1, %s7228_s17  }
 0x892   : > { %p18_p4 = scmp.ge.s32.totalorder %s21_s17, 4  }
 0x894   :  { %20 = sbr.rel (!%p18_p4) target bundleno = 1 (0x1), region = 142 }

</bundles_post_ra>
